<compile_context>
chip_gen: v5e
topology: v5e:2x2
jax: 0.10.0
libtpu: 0.0.40
codegen_flags: <defaults>
</compile_context>

<pallas_src>
import functools

import jax
import jax.numpy as jnp
from jax.experimental import pallas as pl
from jax.experimental.pallas import tpu as pltpu


def _round_up(x, m):
    return (x + m - 1) // m * m


def _pad2(a, rows, cols, dtype=None):
    out = jnp.pad(a, ((0, rows - a.shape[0]), (0, cols - a.shape[1])))
    return out.astype(dtype) if dtype is not None else out


_VMEM_CAP = 48 << 20          # leave headroom below v7x's 64 MiB physical VMEM
_FUSED_BUDGET = 32 << 20      # resident-A fused path budget


def _compiler_params(dimension_semantics, vmem_bytes_needed):
    vmem = int(min(max(2 * vmem_bytes_needed + (4 << 20), 16 << 20), _VMEM_CAP))
    return pltpu.CompilerParams(dimension_semantics=dimension_semantics,
                                vmem_limit_bytes=vmem)


# ------------------------------ kernel bodies --------------------------------

def _fused_kernel(a_ref, x_ref, pool_ref, w1_ref, b1_ref, w2_ref, b2_ref,
                  w3_ref, b3_ref, wl_ref, bl_ref, o_ref):
    # Everything resident in VMEM: 3 GCN layers + mean pool + Linear in one call.
    f32 = jnp.float32
    bf16 = jnp.bfloat16
    # conv1
    z1 = jnp.dot(x_ref[...], w1_ref[...], preferred_element_type=f32)
    h1 = jnp.maximum(
        jnp.dot(a_ref[...], z1.astype(bf16), preferred_element_type=f32)
        + b1_ref[...], 0.0)
    # conv2
    z2 = jnp.dot(h1.astype(bf16), w2_ref[...], preferred_element_type=f32)
    h2 = jnp.maximum(
        jnp.dot(a_ref[...], z2.astype(bf16), preferred_element_type=f32)
        + b2_ref[...], 0.0)
    # conv3 (no ReLU)
    z3 = jnp.dot(h2.astype(bf16), w3_ref[...], preferred_element_type=f32)
    agg3 = (jnp.dot(a_ref[...], z3.astype(bf16), preferred_element_type=f32)
            + b3_ref[...])
    # global_mean_pool: padded pool columns are zero, so padded rows are ignored.
    g = jnp.dot(pool_ref[...], agg3.astype(bf16), preferred_element_type=f32)
    # F.dropout(p=0.5, training=False) is identity in eval mode.
    y = jnp.dot(g.astype(bf16), wl_ref[...], preferred_element_type=f32) + bl_ref[...]
    o_ref[...] = y


def _gcn_layer_kernel(a_ref, z_ref, b_ref, wn_ref, o_ref, acc_ref, *, tile_n):
    # relu(A @ Z + b) @ W_next for one row tile of A; Z is fully VMEM-resident,
    # reduction over column tiles k with an f32 accumulator.
    k = pl.program_id(1)

    @pl.when(k == 0)
    def _init():
        acc_ref[...] = jnp.zeros_like(acc_ref)

    off = pl.multiple_of(k * tile_n, tile_n)
    acc_ref[...] += jnp.dot(a_ref[...], z_ref[pl.ds(off, tile_n), :],
                            preferred_element_type=jnp.float32)

    @pl.when(k == pl.num_programs(1) - 1)
    def _epilogue():
        h = jnp.maximum(acc_ref[...] + b_ref[...], 0.0)           # bias + ReLU
        o_ref[...] = jnp.dot(h.astype(wn_ref.dtype), wn_ref[...],
                             preferred_element_type=jnp.float32).astype(o_ref.dtype)


def _head_kernel(pa_ref, z_ref, b3_ref, wl_ref, bl_ref, o_ref, acc_ref):
    # g = (pool @ A) @ Z3 + b3 ; y = g @ Wl + bl.  Reduction over column tiles.
    # (pool rows sum to 1 -> pool @ b3 == b3; assumes every graph has >=1 node.)
    k = pl.program_id(0)

    @pl.when(k == 0)
    def _init():
        acc_ref[...] = jnp.zeros_like(acc_ref)

    acc_ref[...] += jnp.dot(pa_ref[...], z_ref[...],
                            preferred_element_type=jnp.float32)

    @pl.when(k == pl.num_programs(0) - 1)
    def _epilogue():
        g = acc_ref[...] + b3_ref[...]
        # F.dropout(p=0.5, training=False) is identity in eval mode.
        y = jnp.dot(g.astype(wl_ref.dtype), wl_ref[...],
                    preferred_element_type=jnp.float32) + bl_ref[...]
        o_ref[...] = y


# ----------------------------- pallas_call wrappers ---------------------------

def _fused_forward(a_b, x_b, pool_b, w1_b, b1_p, w2_b, b2_p, w3_b, b3_p,
                   wl_b, bl_p):
    n_pad = a_b.shape[0]
    f_pad = x_b.shape[1]
    h_pad = w1_b.shape[1]
    b_pad, c_pad = pool_b.shape[0], wl_b.shape[1]

    flops = (2 * n_pad * f_pad * h_pad + 6 * n_pad * n_pad * h_pad
             + 4 * n_pad * h_pad * h_pad + 2 * b_pad * n_pad * h_pad
             + 2 * b_pad * h_pad * c_pad)
    bytes_acc = (n_pad * n_pad * 2 + n_pad * f_pad * 2 + b_pad * n_pad * 2
                 + f_pad * h_pad * 2 + 2 * h_pad * h_pad * 2 + h_pad * c_pad * 2
                 + 3 * h_pad * 4 + c_pad * 4 + b_pad * c_pad * 4)
    vmem_need = bytes_acc + 8 * n_pad * h_pad * 4     # hidden-state temporaries

    def _full(arr):
        return pl.BlockSpec(arr.shape, lambda i: (0, 0))

    return pl.pallas_call(
        _fused_kernel,
        out_shape=jax.ShapeDtypeStruct((b_pad, c_pad), jnp.float32),
        grid_spec=pltpu.PrefetchScalarGridSpec(
            num_scalar_prefetch=0,
            grid=(1,),
            in_specs=[_full(a_b), _full(x_b), _full(pool_b),
                      _full(w1_b), _full(b1_p), _full(w2_b), _full(b2_p),
                      _full(w3_b), _full(b3_p), _full(wl_b), _full(bl_p)],
            out_specs=pl.BlockSpec((b_pad, c_pad), lambda i: (0, 0)),
        ),
        compiler_params=_compiler_params(("arbitrary",), vmem_need),
        cost_estimate=pl.CostEstimate(flops=flops, transcendentals=0,
                                      bytes_accessed=bytes_acc),
    )(a_b, x_b, pool_b, w1_b, b1_p, w2_b, b2_p, w3_b, b3_p, wl_b, bl_p)


def _gcn_layer(a, z, b, w_next, *, tile):
    n = a.shape[0]
    h_in = z.shape[1]
    h_out = w_next.shape[1]
    n_row = n // tile
    n_col = n // tile
    flops = 2 * n * n * h_in + 2 * n * h_in * h_out
    bytes_acc = n * n * 2 + n * h_in * 2 + h_in * h_out * 2 + n * h_out * 2
    vmem_need = (2 * tile * tile * 2       # double-buffered A tiles (bf16)
                 + 2 * n * h_in * 2        # resident Z (bf16)
                 + tile * h_in * 4         # f32 accumulator scratch
                 + h_in * h_out * 2        # resident W_next
                 + 2 * tile * h_out * 2)   # output tiles
    return pl.pallas_call(
        functools.partial(_gcn_layer_kernel, tile_n=tile),
        out_shape=jax.ShapeDtypeStruct((n, h_out), jnp.bfloat16),
        grid_spec=pltpu.PrefetchScalarGridSpec(
            num_scalar_prefetch=0,
            grid=(n_row, n_col),                       # reduction axis last
            in_specs=[pl.BlockSpec((tile, tile), lambda i, k: (i, k)),
                      pl.BlockSpec((n, h_in), lambda i, k: (0, 0)),   # resident Z
                      pl.BlockSpec((1, h_in), lambda i, k: (0, 0)),
                      pl.BlockSpec((h_in, h_out), lambda i, k: (0, 0))],
            out_specs=pl.BlockSpec((tile, h_out), lambda i, k: (i, 0)),
            scratch_shapes=[pltpu.VMEM((tile, h_in), jnp.float32)],
        ),
        compiler_params=_compiler_params(("parallel", "arbitrary"), vmem_need),
        cost_estimate=pl.CostEstimate(flops=flops, transcendentals=0,
                                      bytes_accessed=bytes_acc),
    )(a, z, b, w_next)


def _head(pa, z, b3, wl, bl, *, tile):
    b_pad, n = pa.shape
    h = z.shape[1]
    c = wl.shape[1]
    flops = 2 * b_pad * n * h + 2 * b_pad * h * c
    bytes_acc = b_pad * n * 2 + n * h * 2 + h * c * 2 + b_pad * c * 4
    vmem_need = (2 * b_pad * tile * 2 + 2 * tile * h * 2
                 + b_pad * h * 4 + h * c * 2 + b_pad * c * 4)
    return pl.pallas_call(
        _head_kernel,
        out_shape=jax.ShapeDtypeStruct((b_pad, c), jnp.float32),
        grid_spec=pltpu.PrefetchScalarGridSpec(
            num_scalar_prefetch=0,
            grid=(n // tile,),
            in_specs=[pl.BlockSpec((b_pad, tile), lambda k: (0, k)),
                      pl.BlockSpec((tile, h), lambda k: (k, 0)),
                      pl.BlockSpec((1, h), lambda k: (0, 0)),
                      pl.BlockSpec((h, c), lambda k: (0, 0)),
                      pl.BlockSpec((1, c), lambda k: (0, 0))],
            out_specs=pl.BlockSpec((b_pad, c), lambda k: (0, 0)),
            scratch_shapes=[pltpu.VMEM((b_pad, h), jnp.float32)],
        ),
        compiler_params=_compiler_params(("arbitrary",), vmem_need),
        cost_estimate=pl.CostEstimate(flops=flops, transcendentals=0,
                                      bytes_accessed=bytes_acc),
    )(pa, z, b3, wl, bl)


@functools.partial(jax.jit, static_argnames=("tile", "force_streamed"))
def gcn3l_forward(a_hat, x, w1, b1, w2, b2, w3, b3, pool, wl, bl,
                  *, tile=512, force_streamed=False):
    assert tile % 128 == 0
    n, f = x.shape
    b = pool.shape[0]
    c = wl.shape[1]

    f_pad = _round_up(f, 128)
    h_pad = _round_up(w1.shape[1], 128)
    c_pad = _round_up(c, 128)
    b_pad = _round_up(b, 8)
    n_128 = _round_up(n, 128)

    # Resident-A fused path if bf16 A_hat (+ hidden-state temporaries) fits VMEM.
    fused_bytes = (2 * n_128 * n_128 * 2 + n_128 * f_pad * 2
                   + b_pad * n_128 * 2 + 8 * n_128 * h_pad * 4)
    use_fused = (not force_streamed) and fused_bytes <= _FUSED_BUDGET

    if use_fused:
        n_pad = n_128
    else:
        tile = max(128, min(tile, n_128))   # clamp for small graphs
        n_pad = _round_up(n, tile)

    a_b = _pad2(a_hat, n_pad, n_pad, jnp.bfloat16)
    x_b = _pad2(x, n_pad, f_pad, jnp.bfloat16)
    pool_b = _pad2(pool, b_pad, n_pad, jnp.bfloat16)
    w1_b = _pad2(w1, f_pad, h_pad, jnp.bfloat16)
    w2_b = _pad2(w2, h_pad, h_pad, jnp.bfloat16)
    w3_b = _pad2(w3, h_pad, h_pad, jnp.bfloat16)
    wl_b = _pad2(wl, h_pad, c_pad, jnp.bfloat16)
    b1_p = _pad2(b1.reshape(1, -1), 1, h_pad, jnp.float32)
    b2_p = _pad2(b2.reshape(1, -1), 1, h_pad, jnp.float32)
    b3_p = _pad2(b3.reshape(1, -1), 1, h_pad, jnp.float32)
    bl_p = _pad2(bl.reshape(1, -1), 1, c_pad, jnp.float32)

    if use_fused:
        y = _fused_forward(a_b, x_b, pool_b, w1_b, b1_p, w2_b, b2_p,
                           w3_b, b3_p, wl_b, bl_p)
        return y[:b, :c]

    # ------------------------------ streamed path ------------------------------
    # z1 = X @ W1 (tiny; XLA bf16 matmul, avoids a dedicated kernel launch).
    z1 = jnp.dot(x_b, w1_b, preferred_element_type=jnp.float32).astype(jnp.bfloat16)
    z2 = _gcn_layer(a_b, z1, b1_p, w2_b, tile=tile)    # relu(A z1 + b1) @ W2
    z3 = _gcn_layer(a_b, z2, b2_p, w3_b, tile=tile)    # relu(A z2 + b2) @ W3
    # Layer-3 has no ReLU, so fold global_mean_pool into its aggregation:
    # pool @ (A z3 + b3) == (pool @ A) @ z3 + b3.  bf16 pass over A (third & last).
    pa = jnp.dot(pool_b, a_b, preferred_element_type=jnp.float32).astype(jnp.bfloat16)
    y = _head(pa, z3, b3_p, wl_b, bl_p, tile=tile)
    return y[:b, :c]


# ------------------------------- plain-JAX glue --------------------------------

def build_normalized_adjacency(edge_index, num_nodes):
    """D^{-1/2} (A + I) D^{-1/2}, matching PyG GCNConv default normalization."""
    src, dst = edge_index[0], edge_index[1]
    a = jnp.zeros((num_nodes, num_nodes), jnp.float32)
    a = a.at[dst, src].add(1.0)                       # scatter-add (PyG semantics)
    a = a + jnp.eye(num_nodes, dtype=jnp.float32)     # self loops
    deg = a.sum(axis=1)
    dinv = jnp.where(deg > 0, jax.lax.rsqrt(deg), 0.0)
    return dinv[:, None] * a * dinv[None, :]


def build_mean_pool_matrix(batch, num_graphs):
    """P (B, N): P[b, i] = 1/count_b if batch[i] == b else 0."""
    onehot = (batch[None, :] == jnp.arange(num_graphs)[:, None]).astype(jnp.float32)
    counts = onehot.sum(axis=1, keepdims=True)
    return onehot / jnp.maximum(counts, 1.0)


def glorot(key, shape):
    fan_in, fan_out = shape
    limit = jnp.sqrt(6.0 / (fan_in + fan_out))
    return jax.random.uniform(key, shape, jnp.float32, -limit, limit)


if __name__ == "__main__":
    # Small deterministic problem: 2 ring graphs of 100 nodes each.
    NUM_NODES = 200
    NUM_FEATURES = 8
    HIDDEN = 32
    NUM_CLASSES = 4
    NUM_GRAPHS = 2
    NODES_PER_GRAPH = NUM_NODES // NUM_GRAPHS

    key = jax.random.PRNGKey(0)
    kx, k1, k2, k3, kb1, kb2, kb3, kl, klb = jax.random.split(key, 9)

    x = jax.random.normal(kx, (NUM_NODES, NUM_FEATURES), jnp.float32)

    srcs, dsts = [], []
    for g in range(NUM_GRAPHS):
        base = g * NODES_PER_GRAPH
        for i in range(NODES_PER_GRAPH):
            u = base + i
            v = base + (i + 1) % NODES_PER_GRAPH
            srcs += [u, v]
            dsts += [v, u]
    edge_index = jnp.array([srcs, dsts], dtype=jnp.int32)
    batch = jnp.repeat(jnp.arange(NUM_GRAPHS, dtype=jnp.int32), NODES_PER_GRAPH)

    w1 = glorot(k1, (NUM_FEATURES, HIDDEN))
    w2 = glorot(k2, (HIDDEN, HIDDEN))
    w3 = glorot(k3, (HIDDEN, HIDDEN))
    wl = glorot(kl, (HIDDEN, NUM_CLASSES))
    b1 = jax.random.uniform(kb1, (HIDDEN,), jnp.float32, -0.1, 0.1)
    b2 = jax.random.uniform(kb2, (HIDDEN,), jnp.float32, -0.1, 0.1)
    b3 = jax.random.uniform(kb3, (HIDDEN,), jnp.float32, -0.1, 0.1)
    bl = jax.random.uniform(klb, (NUM_CLASSES,), jnp.float32, -0.1, 0.1)

    a_hat = build_normalized_adjacency(edge_index, NUM_NODES)
    pool = build_mean_pool_matrix(batch, NUM_GRAPHS)

    # Pure-JAX f32 reference.
    h1 = jnp.maximum(a_hat @ (x @ w1) + b1, 0.0)
    h2 = jnp.maximum(a_hat @ (h1 @ w2) + b2, 0.0)
    h3 = a_hat @ (h2 @ w3) + b3
    ref = (pool @ h3) @ wl + bl

    # Fused (resident-A) path — the default for small graphs.
    out_fused = jax.block_until_ready(
        gcn3l_forward(a_hat, x, w1, b1, w2, b2, w3, b3, pool, wl, bl))
    # Streamed (tiled) path — what large graphs take; forced here with small tiles
    # so the reduction grid (2x2) and the head accumulation are exercised too.
    out_streamed = jax.block_until_ready(
        gcn3l_forward(a_hat, x, w1, b1, w2, b2, w3, b3, pool, wl, bl,
                      tile=128, force_streamed=True))

    assert out_fused.shape == (NUM_GRAPHS, NUM_CLASSES)
    assert out_streamed.shape == (NUM_GRAPHS, NUM_CLASSES)
    # bf16 matmul inputs (f32 accumulation) => loosened tolerance vs f32 reference.
    assert jnp.allclose(out_fused, ref, atol=5e-2, rtol=5e-2), (out_fused, ref)
    assert jnp.allclose(out_streamed, ref, atol=5e-2, rtol=5e-2), (out_streamed, ref)
    print("KERNEL_OK")
</pallas_src>

<mosaic_0001>
module attributes {stable_mosaic.version = 11 : i64} {
  func.func @_fused_kernel(%arg0: i32, %arg1: memref<256x256xbf16, #tpu.memory_space<vmem>>, %arg2: memref<256x128xbf16, #tpu.memory_space<vmem>>, %arg3: memref<8x256xbf16, #tpu.memory_space<vmem>>, %arg4: memref<128x128xbf16, #tpu.memory_space<vmem>>, %arg5: memref<1x128xf32, #tpu.memory_space<vmem>>, %arg6: memref<128x128xbf16, #tpu.memory_space<vmem>>, %arg7: memref<1x128xf32, #tpu.memory_space<vmem>>, %arg8: memref<128x128xbf16, #tpu.memory_space<vmem>>, %arg9: memref<1x128xf32, #tpu.memory_space<vmem>>, %arg10: memref<128x128xbf16, #tpu.memory_space<vmem>>, %arg11: memref<1x128xf32, #tpu.memory_space<vmem>>, %arg12: memref<8x128xf32, #tpu.memory_space<vmem>>) attributes {dimension_semantics = [#tpu.dimension_semantics<arbitrary>], iteration_bounds = array<i64: 1>, scalar_prefetch = 0 : i64, scratch_operands = 0 : i64, tpu.core_type = #tpu.core_type<tc>, window_params = [{pipeline_mode = #tpu.pipeline_mode<synchronous>, transform_indices = @transform_0, window_bounds = array<i64: 256, 256>}, {pipeline_mode = #tpu.pipeline_mode<synchronous>, transform_indices = @transform_1, window_bounds = array<i64: 256, 128>}, {pipeline_mode = #tpu.pipeline_mode<synchronous>, transform_indices = @transform_2, window_bounds = array<i64: 8, 256>}, {pipeline_mode = #tpu.pipeline_mode<synchronous>, transform_indices = @transform_3, window_bounds = array<i64: 128, 128>}, {pipeline_mode = #tpu.pipeline_mode<synchronous>, transform_indices = @transform_4, window_bounds = array<i64: 1, 128>}, {pipeline_mode = #tpu.pipeline_mode<synchronous>, transform_indices = @transform_5, window_bounds = array<i64: 128, 128>}, {pipeline_mode = #tpu.pipeline_mode<synchronous>, transform_indices = @transform_6, window_bounds = array<i64: 1, 128>}, {pipeline_mode = #tpu.pipeline_mode<synchronous>, transform_indices = @transform_7, window_bounds = array<i64: 128, 128>}, {pipeline_mode = #tpu.pipeline_mode<synchronous>, transform_indices = @transform_8, window_bounds = array<i64: 1, 128>}, {pipeline_mode = #tpu.pipeline_mode<synchronous>, transform_indices = @transform_9, window_bounds = array<i64: 128, 128>}, {pipeline_mode = #tpu.pipeline_mode<synchronous>, transform_indices = @transform_10, window_bounds = array<i64: 1, 128>}, {pipeline_mode = #tpu.pipeline_mode<synchronous>, transform_indices = @transform_11, window_bounds = array<i64: 8, 128>}]} {
    %c0 = arith.constant 0 : index
    %c0_0 = arith.constant 0 : index
    %0 = vector.load %arg2[%c0, %c0_0] : memref<256x128xbf16, #tpu.memory_space<vmem>>, vector<256x128xbf16>
    %c0_1 = arith.constant 0 : index
    %c0_2 = arith.constant 0 : index
    %1 = vector.load %arg4[%c0_1, %c0_2] : memref<128x128xbf16, #tpu.memory_space<vmem>>, vector<128x128xbf16>
    %cst = arith.constant dense<0.000000e+00> : vector<256x128xf32>
    %2 = tpu.matmul %0, %1, %cst {dimension_numbers = #tpu.dot_dimension_numbers<[1], [0], [0], [1], [0, 0, 1, 1], [], []>} : vector<256x128xbf16>, vector<128x128xbf16>, vector<256x128xf32> -> vector<256x128xf32>
    %c0_3 = arith.constant 0 : index
    %c0_4 = arith.constant 0 : index
    %3 = vector.load %arg1[%c0_3, %c0_4] : memref<256x256xbf16, #tpu.memory_space<vmem>>, vector<256x256xbf16>
    %4 = arith.truncf %2 : vector<256x128xf32> to vector<256x128xbf16>
    %cst_5 = arith.constant dense<0.000000e+00> : vector<256x128xf32>
    %5 = tpu.matmul %3, %4, %cst_5 {dimension_numbers = #tpu.dot_dimension_numbers<[1], [0], [0], [1], [0, 0, 1, 1], [], []>} : vector<256x256xbf16>, vector<256x128xbf16>, vector<256x128xf32> -> vector<256x128xf32>
    %c0_6 = arith.constant 0 : index
    %c0_7 = arith.constant 0 : index
    %6 = vector.load %arg5[%c0_6, %c0_7] : memref<1x128xf32, #tpu.memory_space<vmem>>, vector<1x128xf32>
    %7 = vector.broadcast %6 : vector<1x128xf32> to vector<256x128xf32>
    %8 = arith.addf %5, %7 : vector<256x128xf32>
    %cst_8 = arith.constant 0.000000e+00 : f32
    %9 = vector.broadcast %cst_8 : f32 to vector<256x128xf32>
    %10 = arith.maximumf %8, %9 : vector<256x128xf32>
    %11 = arith.truncf %10 : vector<256x128xf32> to vector<256x128xbf16>
    %c0_9 = arith.constant 0 : index
    %c0_10 = arith.constant 0 : index
    %12 = vector.load %arg6[%c0_9, %c0_10] : memref<128x128xbf16, #tpu.memory_space<vmem>>, vector<128x128xbf16>
    %cst_11 = arith.constant dense<0.000000e+00> : vector<256x128xf32>
    %13 = tpu.matmul %11, %12, %cst_11 {dimension_numbers = #tpu.dot_dimension_numbers<[1], [0], [0], [1], [0, 0, 1, 1], [], []>} : vector<256x128xbf16>, vector<128x128xbf16>, vector<256x128xf32> -> vector<256x128xf32>
    %c0_12 = arith.constant 0 : index
    %c0_13 = arith.constant 0 : index
    %14 = vector.load %arg1[%c0_12, %c0_13] : memref<256x256xbf16, #tpu.memory_space<vmem>>, vector<256x256xbf16>
    %15 = arith.truncf %13 : vector<256x128xf32> to vector<256x128xbf16>
    %cst_14 = arith.constant dense<0.000000e+00> : vector<256x128xf32>
    %16 = tpu.matmul %14, %15, %cst_14 {dimension_numbers = #tpu.dot_dimension_numbers<[1], [0], [0], [1], [0, 0, 1, 1], [], []>} : vector<256x256xbf16>, vector<256x128xbf16>, vector<256x128xf32> -> vector<256x128xf32>
    %c0_15 = arith.constant 0 : index
    %c0_16 = arith.constant 0 : index
    %17 = vector.load %arg7[%c0_15, %c0_16] : memref<1x128xf32, #tpu.memory_space<vmem>>, vector<1x128xf32>
    %18 = vector.broadcast %17 : vector<1x128xf32> to vector<256x128xf32>
    %19 = arith.addf %16, %18 : vector<256x128xf32>
    %cst_17 = arith.constant 0.000000e+00 : f32
    %20 = vector.broadcast %cst_17 : f32 to vector<256x128xf32>
    %21 = arith.maximumf %19, %20 : vector<256x128xf32>
    %22 = arith.truncf %21 : vector<256x128xf32> to vector<256x128xbf16>
    %c0_18 = arith.constant 0 : index
    %c0_19 = arith.constant 0 : index
    %23 = vector.load %arg8[%c0_18, %c0_19] : memref<128x128xbf16, #tpu.memory_space<vmem>>, vector<128x128xbf16>
    %cst_20 = arith.constant dense<0.000000e+00> : vector<256x128xf32>
    %24 = tpu.matmul %22, %23, %cst_20 {dimension_numbers = #tpu.dot_dimension_numbers<[1], [0], [0], [1], [0, 0, 1, 1], [], []>} : vector<256x128xbf16>, vector<128x128xbf16>, vector<256x128xf32> -> vector<256x128xf32>
    %c0_21 = arith.constant 0 : index
    %c0_22 = arith.constant 0 : index
    %25 = vector.load %arg1[%c0_21, %c0_22] : memref<256x256xbf16, #tpu.memory_space<vmem>>, vector<256x256xbf16>
    %26 = arith.truncf %24 : vector<256x128xf32> to vector<256x128xbf16>
    %cst_23 = arith.constant dense<0.000000e+00> : vector<256x128xf32>
    %27 = tpu.matmul %25, %26, %cst_23 {dimension_numbers = #tpu.dot_dimension_numbers<[1], [0], [0], [1], [0, 0, 1, 1], [], []>} : vector<256x256xbf16>, vector<256x128xbf16>, vector<256x128xf32> -> vector<256x128xf32>
    %c0_24 = arith.constant 0 : index
    %c0_25 = arith.constant 0 : index
    %28 = vector.load %arg9[%c0_24, %c0_25] : memref<1x128xf32, #tpu.memory_space<vmem>>, vector<1x128xf32>
    %29 = vector.broadcast %28 : vector<1x128xf32> to vector<256x128xf32>
    %30 = arith.addf %27, %29 : vector<256x128xf32>
    %c0_26 = arith.constant 0 : index
    %c0_27 = arith.constant 0 : index
    %31 = vector.load %arg3[%c0_26, %c0_27] : memref<8x256xbf16, #tpu.memory_space<vmem>>, vector<8x256xbf16>
    %32 = arith.truncf %30 : vector<256x128xf32> to vector<256x128xbf16>
    %cst_28 = arith.constant dense<0.000000e+00> : vector<8x128xf32>
    %33 = tpu.matmul %31, %32, %cst_28 {dimension_numbers = #tpu.dot_dimension_numbers<[1], [0], [0], [1], [0, 0, 1, 1], [], []>} : vector<8x256xbf16>, vector<256x128xbf16>, vector<8x128xf32> -> vector<8x128xf32>
    %34 = arith.truncf %33 : vector<8x128xf32> to vector<8x128xbf16>
    %c0_29 = arith.constant 0 : index
    %c0_30 = arith.constant 0 : index
    %35 = vector.load %arg10[%c0_29, %c0_30] : memref<128x128xbf16, #tpu.memory_space<vmem>>, vector<128x128xbf16>
    %cst_31 = arith.constant dense<0.000000e+00> : vector<8x128xf32>
    %36 = tpu.matmul %34, %35, %cst_31 {dimension_numbers = #tpu.dot_dimension_numbers<[1], [0], [0], [1], [0, 0, 1, 1], [], []>} : vector<8x128xbf16>, vector<128x128xbf16>, vector<8x128xf32> -> vector<8x128xf32>
    %c0_32 = arith.constant 0 : index
    %c0_33 = arith.constant 0 : index
    %37 = vector.load %arg11[%c0_32, %c0_33] : memref<1x128xf32, #tpu.memory_space<vmem>>, vector<1x128xf32>
    %38 = vector.broadcast %37 : vector<1x128xf32> to vector<8x128xf32>
    %39 = arith.addf %36, %38 : vector<8x128xf32>
    %c0_34 = arith.constant 0 : index
    %c0_35 = arith.constant 0 : index
    %40 = vector.load %arg12[%c0_34, %c0_35] : memref<8x128xf32, #tpu.memory_space<vmem>>, vector<8x128xf32>
    tpu.vector_store %arg12[%c0_34, %c0_35], %39 {strides = array<i32>} : memref<8x128xf32, #tpu.memory_space<vmem>>, vector<8x128xf32>,
    return
  }
  func.func @transform_0(%arg0: i32) -> (i32, i32) {
    %c0_i32 = arith.constant 0 : i32
    %c0_i32_0 = arith.constant 0 : i32
    %c0_i32_1 = arith.constant 0 : i32
    return %c0_i32, %c0_i32_0 : i32, i32
  }
  func.func @transform_1(%arg0: i32) -> (i32, i32) {
    %c0_i32 = arith.constant 0 : i32
    %c0_i32_0 = arith.constant 0 : i32
    %c0_i32_1 = arith.constant 0 : i32
    return %c0_i32, %c0_i32_0 : i32, i32
  }
  func.func @transform_2(%arg0: i32) -> (i32, i32) {
    %c0_i32 = arith.constant 0 : i32
    %c0_i32_0 = arith.constant 0 : i32
    %c0_i32_1 = arith.constant 0 : i32
    return %c0_i32, %c0_i32_0 : i32, i32
  }
  func.func @transform_3(%arg0: i32) -> (i32, i32) {
    %c0_i32 = arith.constant 0 : i32
    %c0_i32_0 = arith.constant 0 : i32
    %c0_i32_1 = arith.constant 0 : i32
    return %c0_i32, %c0_i32_0 : i32, i32
  }
  func.func @transform_4(%arg0: i32) -> (i32, i32) {
    %c0_i32 = arith.constant 0 : i32
    %c0_i32_0 = arith.constant 0 : i32
    %c0_i32_1 = arith.constant 0 : i32
    return %c0_i32, %c0_i32_0 : i32, i32
  }
  func.func @transform_5(%arg0: i32) -> (i32, i32) {
    %c0_i32 = arith.constant 0 : i32
    %c0_i32_0 = arith.constant 0 : i32
    %c0_i32_1 = arith.constant 0 : i32
    return %c0_i32, %c0_i32_0 : i32, i32
  }
  func.func @transform_6(%arg0: i32) -> (i32, i32) {
    %c0_i32 = arith.constant 0 : i32
    %c0_i32_0 = arith.constant 0 : i32
    %c0_i32_1 = arith.constant 0 : i32
    return %c0_i32, %c0_i32_0 : i32, i32
  }
  func.func @transform_7(%arg0: i32) -> (i32, i32) {
    %c0_i32 = arith.constant 0 : i32
    %c0_i32_0 = arith.constant 0 : i32
    %c0_i32_1 = arith.constant 0 : i32
    return %c0_i32, %c0_i32_0 : i32, i32
  }
  func.func @transform_8(%arg0: i32) -> (i32, i32) {
    %c0_i32 = arith.constant 0 : i32
    %c0_i32_0 = arith.constant 0 : i32
    %c0_i32_1 = arith.constant 0 : i32
    return %c0_i32, %c0_i32_0 : i32, i32
  }
  func.func @transform_9(%arg0: i32) -> (i32, i32) {
    %c0_i32 = arith.constant 0 : i32
    %c0_i32_0 = arith.constant 0 : i32
    %c0_i32_1 = arith.constant 0 : i32
    return %c0_i32, %c0_i32_0 : i32, i32
  }
  func.func @transform_10(%arg0: i32) -> (i32, i32) {
    %c0_i32 = arith.constant 0 : i32
    %c0_i32_0 = arith.constant 0 : i32
    %c0_i32_1 = arith.constant 0 : i32
    return %c0_i32, %c0_i32_0 : i32, i32
  }
  func.func @transform_11(%arg0: i32) -> (i32, i32) {
    %c0_i32 = arith.constant 0 : i32
    %c0_i32_0 = arith.constant 0 : i32
    %c0_i32_1 = arith.constant 0 : i32
    return %c0_i32, %c0_i32_0 : i32, i32
  }
}

</mosaic_0001>

<bundles_post_ra>
// kernel: gcn3l_forward.1
= control target key start
LH: loop header
LB: loop body
LE: loop exit
PB: predicated region body
PF: predicated region fallthrough
CT: control target
= control target key end

     0   :  { %s2868_s3 = inlined_call_operand.vmem [shape: bf16[128,128], index: 3, kind: input, shape index: {}]   ;;  %s2869_s1 = inlined_call_operand.vmem [shape: bf16[256,128], index: 1, kind: input, shape index: {}]   ;;  %s2870_s0 = inlined_call_operand.vmem [shape: bf16[256,256], index: 0, kind: input, shape index: {}]   ;;  %s2871_s4 = inlined_call_operand.vmem [shape: f32[1,128], index: 4, kind: input, shape index: {}]   ;;  %s2872_s5 = inlined_call_operand.vmem [shape: bf16[128,128], index: 5, kind: input, shape index: {}]   ;;  %s2873_s6 = inlined_call_operand.vmem [shape: f32[1,128], index: 6, kind: input, shape index: {}]   ;;  %s2874_s7 = inlined_call_operand.vmem [shape: bf16[128,128], index: 7, kind: input, shape index: {}]   ;;  %s2875_s8 = inlined_call_operand.vmem [shape: f32[1,128], index: 8, kind: input, shape index: {}]   ;;  %s2876_s2 = inlined_call_operand.vmem [shape: bf16[8,256], index: 2, kind: input, shape index: {}]   ;;  %s2877_s9 = inlined_call_operand.vmem [shape: bf16[128,128], index: 9, kind: input, shape index: {}]   ;;  %s2878_s10 = inlined_call_operand.vmem [shape: f32[1,128], index: 10, kind: input, shape index: {}]   ;;  %s2879_s11 = inlined_call_operand.vmem [shape: f32[8,128], index: 11, kind: output, shape index: {}]  }
   0x1   :  { %v1987_v0 = vld [vmem:[%s2868_s3 + $0x38] sm:$0xff]  ;;  %v1986_v1 = vld [vmem:[%s2868_s3 + $0x30] sm:$0xff]  ;;  %v1985_v2 = vld [vmem:[%s2868_s3 + $0x28] sm:$0xff] }
   0x2   :  { %230 = vmatpush.bf16.msra.mxu0 %v1987_v0  ;;  %2044 = vmatpush.bf16.msra.mxu1 %v1987_v0  ;;  %v1984_v3 = vld [vmem:[%s2868_s3 + $0x20] sm:$0xff]  ;;  %v1983_v4 = vld [vmem:[%s2868_s3 + $0x18] sm:$0xff]  ;;  %v1982_v5 = vld [vmem:[%s2868_s3 + $0x10] sm:$0xff] }
   0x3   :  { %2045 = vmatpush.bf16.msra.mxu2 %v1987_v0  ;;  %2046 = vmatpush.bf16.msra.mxu3 %v1987_v0  ;;  %v1981_v6 = vld [vmem:[%s2868_s3 + $0x8] sm:$0xff]  ;;  %v1980_v7 = vld [vmem:[%s2868_s3] sm:$0xff]  ;;  %v1970_v13 = vld [vmem:[%s2869_s1 + $0x30] sm:$0xff] }
   0x4   :  { %v1964_v8 = vld [vmem:[%s2869_s1] sm:$0xff]  ;;  %v1969_v9 = vld [vmem:[%s2869_s1 + $0x28] sm:$0xff]  ;;  %v1974_v14 = vld [vmem:[%s2869_s1 + $0x50] sm:$0xff] }
   0x5   :  { %v1973_v10 = vld [vmem:[%s2869_s1 + $0x48] sm:$0xff]  ;;  %v1978_v15 = vld [vmem:[%s2869_s1 + $0x70] sm:$0xff]  ;;  %v1971_v17 = vld [vmem:[%s2869_s1 + $0x38] sm:$0xff] }
   0x6   :  { %231 = vmatpush.bf16.msra.mxu0 %v1986_v1  ;;  %2047 = vmatpush.bf16.msra.mxu1 %v1986_v1  ;;  %v1977_v11 = vld [vmem:[%s2869_s1 + $0x68] sm:$0xff]  ;;  %v1966_v16 = vld [vmem:[%s2869_s1 + $0x10] sm:$0xff]  ;;  %v1975_v18 = vld [vmem:[%s2869_s1 + $0x58] sm:$0xff] }
   0x7   :  { %2048 = vmatpush.bf16.msra.mxu2 %v1986_v1  ;;  %2049 = vmatpush.bf16.msra.mxu3 %v1986_v1  ;;  %v1965_v12 = vld [vmem:[%s2869_s1 + $0x8] sm:$0xff]  ;;  %v1979_v19 = vld [vmem:[%s2869_s1 + $0x78] sm:$0xff]  ;;  %v1972_v21 = vld [vmem:[%s2869_s1 + $0x40] sm:$0xff] }
   0x8   :  { %v1967_v20 = vld [vmem:[%s2869_s1 + $0x18] sm:$0xff]  ;;  %v1976_v22 = vld [vmem:[%s2869_s1 + $0x60] sm:$0xff] }
   0x9   :  { %v1968_v23 = vld [vmem:[%s2869_s1 + $0x20] sm:$0xff] }
   0xa   :  { %232 = vmatpush.bf16.msra.mxu0 %v1985_v2  ;;  %2050 = vmatpush.bf16.msra.mxu1 %v1985_v2 }
   0xb   :  { %2051 = vmatpush.bf16.msra.mxu2 %v1985_v2  ;;  %2052 = vmatpush.bf16.msra.mxu3 %v1985_v2 }
   0xe   :  { %233 = vmatpush.bf16.msra.mxu0 %v1984_v3  ;;  %2053 = vmatpush.bf16.msra.mxu1 %v1984_v3 }
   0xf   :  { %2054 = vmatpush.bf16.msra.mxu2 %v1984_v3  ;;  %2055 = vmatpush.bf16.msra.mxu3 %v1984_v3 }
  0x12   :  { %234 = vmatpush.bf16.msra.mxu0 %v1983_v4  ;;  %2056 = vmatpush.bf16.msra.mxu1 %v1983_v4 }
  0x13   :  { %2057 = vmatpush.bf16.msra.mxu2 %v1983_v4  ;;  %2058 = vmatpush.bf16.msra.mxu3 %v1983_v4  ;;  %v1988_v4 = vld [vmem:[%s2870_s0 + $0x4] sm:$0xf] }
  0x16   :  { %235 = vmatpush.bf16.msra.mxu0 %v1982_v5  ;;  %2059 = vmatpush.bf16.msra.mxu1 %v1982_v5 }
  0x17   :  { %2060 = vmatpush.bf16.msra.mxu2 %v1982_v5  ;;  %2061 = vmatpush.bf16.msra.mxu3 %v1982_v5  ;;  %v1744_v5 = vld [vmem:[%s2870_s0 + $0x8] sm:$0xf0] }
  0x1a   :  { %236 = vmatpush.bf16.msra.mxu0 %v1981_v6  ;;  %2062 = vmatpush.bf16.msra.mxu1 %v1981_v6 }
  0x1b   :  { %2063 = vmatpush.bf16.msra.mxu2 %v1981_v6  ;;  %2064 = vmatpush.bf16.msra.mxu3 %v1981_v6 }
  0x1e   :  { %237 = vmatpush.bf16.msra.mxu0 %v1980_v7  ;;  %2065 = vmatpush.bf16.msra.mxu1 %v1980_v7 }
  0x1f   :  { %2066 = vmatpush.bf16.msra.mxu2 %v1980_v7  ;;  %2067 = vmatpush.bf16.msra.mxu3 %v1980_v7 }
  0x21   :  { %238 = vmatmul.bf16.vlgmr.msra.gmra.mxu0 %v1964_v8  ;;  %263 = vmatmul.bf16.vlgmr.msra.gmra.mxu1 %v1969_v9  ;;  %v2214_v8 = vor.u32 %v1988_v4, %v1744_v5  ;;  %v2005_v4 = vld [vmem:[%s2870_s0 + $0x84] sm:$0xf0] }
  0x22   :  { %283 = vmatmul.bf16.vlgmr.msra.gmra.mxu2 %v1973_v10  ;;  %303 = vmatmul.bf16.vlgmr.msra.gmra.mxu3 %v1977_v11  ;;  %v1742_v10 = vld [vmem:[%s2870_s0] sm:$0xf]  ;;  %v1989_v11 = vld [vmem:[%s2870_s0 + $0x4] sm:$0xf0] }
  0x31   :  { %243 = vmatmul.bf16.gmra.mxu0 %v1965_v12  ;;  %268 = vmatmul.bf16.gmra.mxu1 %v1970_v13  ;;  %v2225_v13 = vor.u32 %v1989_v11, %v1742_v10  ;;  %v2006_v10 = vld [vmem:[%s2870_s0 + $0x94] sm:$0xf]  ;;  %v1816_v11 = vld [vmem:[%s2870_s0 + $0x98] sm:$0xf0] }
  0x32   :  { %288 = vmatmul.bf16.gmra.mxu2 %v1974_v14  ;;  %308 = vmatmul.bf16.gmra.mxu3 %v1978_v15  ;;  %v1990_v14 = vld [vmem:[%s2870_s0 + $0x14] sm:$0xf]  ;;  %v1752_v15 = vld [vmem:[%s2870_s0 + $0x18] sm:$0xf0] }
  0x41   :  { %248 = vmatmul.bf16.gmra.mxu0 %v1966_v16  ;;  %273 = vmatmul.bf16.gmra.mxu1 %v1971_v17  ;;  %v2234_v16 = vor.u32 %v1990_v14, %v1752_v15  ;;  %v1750_v17 = vld [vmem:[%s2870_s0 + $0x10] sm:$0xf]  ;;  %v2408_v15 = vor.u32 %v2006_v10, %v1816_v11 }
  0x42   :  { %293 = vmatmul.bf16.gmra.mxu2 %v1975_v18  ;;  %313 = vmatmul.bf16.gmra.mxu3 %v1979_v19  ;;  %v1991_v18 = vld [vmem:[%s2870_s0 + $0x14] sm:$0xf0] }
  0x43   :  { %v2243_v19 = vor.u32 %v1991_v18, %v1750_v17 }
  0x51   :  { %253 = vmatmul.bf16.gmra.mxu0 %v1967_v20  ;;  %278 = vmatmul.bf16.gmra.mxu1 %v1972_v21  ;;  %v1992_v20 = vld [vmem:[%s2870_s0 + $0x24] sm:$0xf]  ;;  %v1760_v21 = vld [vmem:[%s2870_s0 + $0x28] sm:$0xf0] }
  0x52   :  { %298 = vmatmul.bf16.gmra.mxu2 %v1976_v22  ;;  %v2252_v22 = vor.u32 %v1992_v20, %v1760_v21 }
  0x61   :  { %258 = vmatmul.bf16.gmra.mxu0 %v1968_v23  ;;  %v1758_v23 = vld [vmem:[%s2870_s0 + $0x20] sm:$0xf] }
  0x9e   :  { %v2204_v24 = vpop.f32.mrf.mxu0  ;;  %v264_v25 = vpop.f32.mrf.mxu1 }
  0xa5   :  { %v284_v26 = vpop.f32.mrf.mxu2  ;;  %v304_v27 = vpop.f32.mrf.mxu3 }
  0xa6   :  { %v2206_v28 = vpop.f32.mrf.mxu0  ;;  %v266_v29 = vpop.f32.mrf.mxu1 }
  0xa7   :  { %v356_v52 = vpack.c.bf16 %v266_v29, %v264_v25  ;;  %v351_v12 = vpack.c.bf16 %v2206_v28, %v2204_v24  ;;  %v1993_v24 = vld [vmem:[%s2870_s0 + $0x24] sm:$0xf0]  ;;  %v1766_v29 = vld [vmem:[%s2870_s0 + $0x30] sm:$0xf] }
  0xa8   :  { %v2261_v25 = vor.u32 %v1993_v24, %v1758_v23  ;;  %v1814_v23 = vld [vmem:[%s2870_s0 + $0x90] sm:$0xf]  ;;  %v2007_v24 = vld [vmem:[%s2870_s0 + $0x94] sm:$0xf0] }
  0xad   :  { %v286_v30 = vpop.f32.mrf.mxu2  ;;  %v306_v31 = vpop.f32.mrf.mxu3 }
  0xae   :  { %v244_v32 = vpop.f32.mrf.mxu0  ;;  %v269_v33 = vpop.f32.mrf.mxu1  ;;  %v364_v56 = vpack.c.bf16 %v306_v31, %v304_v27  ;;  %v360_v1 = vpack.c.bf16 %v286_v30, %v284_v26  ;;  %v1994_v26 = vld [vmem:[%s2870_s0 + $0x34] sm:$0xf]  ;;  %v1768_v27 = vld [vmem:[%s2870_s0 + $0x38] sm:$0xf0]  ;;  %v1995_v30 = vld [vmem:[%s2870_s0 + $0x34] sm:$0xf0] }
  0xaf   :  { %v2270_v28 = vor.u32 %v1994_v26, %v1768_v27  ;;  %v2279_v31 = vor.u32 %v1995_v30, %v1766_v29 }
  0xb5   :  { %v289_v34 = vpop.f32.mrf.mxu2  ;;  %v309_v35 = vpop.f32.mrf.mxu3 }
  0xb6   :  { %v246_v36 = vpop.f32.mrf.mxu0  ;;  %v271_v37 = vpop.f32.mrf.mxu1 }
  0xb7   :  { %v357_v47 = vpack.c.bf16 %v271_v37, %v269_v33  ;;  %v352_v9 = vpack.c.bf16 %v246_v36, %v244_v32  ;;  %v1996_v32 = vld [vmem:[%s2870_s0 + $0x44] sm:$0xf]  ;;  %v1776_v33 = vld [vmem:[%s2870_s0 + $0x48] sm:$0xf0]  ;;  %v1997_v36 = vld [vmem:[%s2870_s0 + $0x44] sm:$0xf0] }
  0xbd   :  { %v291_v38 = vpop.f32.mrf.mxu2  ;;  %v311_v39 = vpop.f32.mrf.mxu3 }
  0xbe   :  { %v249_v40 = vpop.f32.mrf.mxu0  ;;  %v274_v41 = vpop.f32.mrf.mxu1  ;;  %v365_v53 = vpack.c.bf16 %v311_v39, %v309_v35  ;;  %v361_v63 = vpack.c.bf16 %v291_v38, %v289_v34  ;;  %v2288_v34 = vor.u32 %v1996_v32, %v1776_v33  ;;  %v1774_v35 = vld [vmem:[%s2870_s0 + $0x40] sm:$0xf]  ;;  %v1998_v38 = vld [vmem:[%s2870_s0 + $0x54] sm:$0xf]  ;;  %v1784_v39 = vld [vmem:[%s2870_s0 + $0x58] sm:$0xf0]  ;;  %v2418_v32 = vor.u32 %v2007_v24, %v1814_v23 }
  0xbf   :  { %v2297_v37 = vor.u32 %v1997_v36, %v1774_v35  ;;  %v2008_v35 = vld [vmem:[%s2870_s0 + $0xa4] sm:$0xf]  ;;  %v1824_v36 = vld [vmem:[%s2870_s0 + $0xa8] sm:$0xf0] }
  0xc5   :  { %v294_v42 = vpop.f32.mrf.mxu2  ;;  %v314_v43 = vpop.f32.mrf.mxu3 }
  0xc6   :  { %v251_v44 = vpop.f32.mrf.mxu0  ;;  %v276_v45 = vpop.f32.mrf.mxu1 }
  0xc7   :  { %v358_v46 = vpack.c.bf16 %v276_v45, %v274_v41  ;;  %v353_v7 = vpack.c.bf16 %v251_v44, %v249_v40  ;;  %v2306_v40 = vor.u32 %v1998_v38, %v1784_v39  ;;  %v2027_v41 = vld [vmem:[%s2872_s5 + $0x38] sm:$0xff]  ;;  %v2000_v45 = vld [vmem:[%s2870_s0 + $0x64] sm:$0xf] }
  0xc8   :  { %821 = vmatpush.bf16.msrb.mxu3 %v2027_v41  ;;  %v2428_v41 = vor.u32 %v2008_v35, %v1824_v36  ;;  %v1838_v35 = vld [vmem:[%s2870_s0 + $0xc0] sm:$0xf]  ;;  %v2013_v36 = vld [vmem:[%s2870_s0 + $0xc4] sm:$0xf0] }
  0xc9   :  { %531 = vmatpush.bf16.msrb.mxu1 %v358_v46  ;;  %v1792_v46 = vld [vmem:[%s2870_s0 + $0x68] sm:$0xf0] }
  0xcd   :  { %v296_v48 = vpop.f32.mrf.mxu2  ;;  %v316_v49 = vpop.f32.mrf.mxu3  ;;  %532 = vmatpush.bf16.msrb.mxu1 %v357_v47  ;;  %v2026_v47 = vld [vmem:[%s2872_s5 + $0x30] sm:$0xff] }
  0xce   :  { %v254_v50 = vpop.f32.mrf.mxu0  ;;  %v366_v51 = vpack.c.bf16 %v316_v49, %v314_v43  ;;  %v279_v60 = vpop.f32.mrf.mxu1  ;;  %v362_v61 = vpack.c.bf16 %v296_v48, %v294_v42  ;;  %v1782_v42 = vld [vmem:[%s2870_s0 + $0x50] sm:$0xf]  ;;  %v1999_v43 = vld [vmem:[%s2870_s0 + $0x54] sm:$0xf0]  ;;  %822 = vmatpush.bf16.msrb.mxu3 %v2026_v47  ;;  %v2330_v48 = vor.u32 %v2000_v45, %v1792_v46  ;;  %v2025_v49 = vld [vmem:[%s2872_s5 + $0x28] sm:$0xff] }
  0xcf   :  { %v2318_v44 = vor.u32 %v1999_v43, %v1782_v42  ;;  %v1822_v47 = vld [vmem:[%s2870_s0 + $0xa0] sm:$0xf] }
  0xd0   :  { %620 = vmatpush.bf16.msrb.mxu2 %v366_v51  ;;  %v2001_v51 = vld [vmem:[%s2870_s0 + $0x64] sm:$0xf0] }
  0xd1   :  { %533 = vmatpush.bf16.msrb.mxu1 %v356_v52  ;;  %v2024_v52 = vld [vmem:[%s2872_s5 + $0x20] sm:$0xff] }
  0xd2   :  { %823 = vmatpush.bf16.msrb.mxu3 %v2025_v49  ;;  %v2009_v49 = vld [vmem:[%s2870_s0 + $0xa4] sm:$0xf0] }
  0xd4   :  { %621 = vmatpush.bf16.msrb.mxu2 %v365_v53 }
  0xd5   :  { %v299_v54 = vpop.f32.mrf.mxu2 }
  0xd6   :  { %v256_v55 = vpop.f32.mrf.mxu0  ;;  %v281_v2 = vpop.f32.mrf.mxu1  ;;  %824 = vmatpush.bf16.msrb.mxu3 %v2024_v52 }
  0xd7   :  { %v354_v3 = vpack.c.bf16 %v256_v55, %v254_v50  ;;  %v359_v6 = vpack.c.bf16 %v281_v2, %v279_v60  ;;  %v1790_v50 = vld [vmem:[%s2870_s0 + $0x60] sm:$0xf]  ;;  %v2002_v55 = vld [vmem:[%s2870_s0 + $0x74] sm:$0xf]  ;;  %v1798_v60 = vld [vmem:[%s2870_s0 + $0x70] sm:$0xf] }
  0xd8   :  { %622 = vmatpush.bf16.msrb.mxu2 %v364_v56  ;;  %v2345_v53 = vor.u32 %v2001_v51, %v1790_v50  ;;  %v1800_v56 = vld [vmem:[%s2870_s0 + $0x78] sm:$0xf0] }
  0xdd   :  { %v301_v57 = vpop.f32.mrf.mxu2 }
  0xde   :  { %v259_v58 = vpop.f32.mrf.mxu0  ;;  %v363_v59 = vpack.c.bf16 %v301_v57, %v299_v54  ;;  %v2023_v54 = vld [vmem:[%s2872_s5 + $0x18] sm:$0xff]  ;;  %v2022_v57 = vld [vmem:[%s2872_s5 + $0x10] sm:$0xff] }
  0xdf   :  { %825 = vmatpush.bf16.msrb.mxu3 %v2023_v54 }
  0xe0   :  { %623 = vmatpush.bf16.msrb.mxu2 %v363_v59  ;;  %v2021_v59 = vld [vmem:[%s2872_s5 + $0x8] sm:$0xff] }
  0xe3   :  { %826 = vmatpush.bf16.msrb.mxu3 %v2022_v57  ;;  %v2010_v57 = vld [vmem:[%s2870_s0 + $0xb4] sm:$0xf] }
  0xe4   :  { %624 = vmatpush.bf16.msrb.mxu2 %v362_v61  ;;  %v2003_v61 = vld [vmem:[%s2870_s0 + $0x74] sm:$0xf0] }
  0xe6   :  { %v261_v62 = vpop.f32.mrf.mxu0 }
  0xe7   :  { %v355_v0 = vpack.c.bf16 %v261_v62, %v259_v58  ;;  %v2360_v58 = vor.u32 %v2002_v55, %v1800_v56  ;;  %827 = vmatpush.bf16.msrb.mxu3 %v2021_v59  ;;  %v2020_v62 = vld [vmem:[%s2872_s5] sm:$0xff]  ;;  %v2438_v55 = vor.u32 %v2009_v49, %v1822_v47  ;;  %v1832_v59 = vld [vmem:[%s2870_s0 + $0xb8] sm:$0xf0]  ;;  %v2014_v47 = vld [vmem:[%s2870_s0 + $0xd4] sm:$0xf] }
  0xe8   :  { %625 = vmatpush.bf16.msrb.mxu2 %v361_v63  ;;  %v2375_v63 = vor.u32 %v2003_v61, %v1798_v60  ;;  %v1848_v49 = vld [vmem:[%s2870_s0 + $0xd8] sm:$0xf0] }
  0xe9   :  { %534 = vmatpush.bf16.msrb.mxu1 %v355_v0  ;;  %v2004_v0 = vld [vmem:[%s2870_s0 + $0x84] sm:$0xf] }
  0xeb   :  { %828 = vmatpush.bf16.msrb.mxu3 %v2020_v62  ;;  %v2448_v62 = vor.u32 %v2010_v57, %v1832_v59 }
  0xec   :  { %626 = vmatpush.bf16.msrb.mxu2 %v360_v1  ;;  %v1808_v1 = vld [vmem:[%s2870_s0 + $0x88] sm:$0xf0] }
  0xed   :  { %535 = vmatpush.bf16.msrb.mxu1 %v354_v3  ;;  %v2384_v2 = vor.u32 %v2004_v0, %v1808_v1  ;;  %v1806_v3 = vld [vmem:[%s2870_s0 + $0x80] sm:$0xf] }
  0xf0   :  { %627 = vmatpush.bf16.msrb.mxu2 %v359_v6  ;;  %v2393_v6 = vor.u32 %v2005_v4, %v1806_v3 }
  0xf1   :  { %536 = vmatpush.bf16.msrb.mxu1 %v353_v7 }
  0xf3   :  { %628 = vmatmul.bf16.vlgmr.msrb.gmra.mxu2 %v2214_v8 }
  0xf5   :  { %537 = vmatpush.bf16.msrb.mxu1 %v352_v9  ;;  %v2398_v9 = vld [vmem:[%s2871_s4] ss:$0 sm:$0xff] }
  0xf9   :  { %538 = vmatpush.bf16.msrb.mxu1 %v351_v12 }
  0xfc   :  { %539 = vmatmul.bf16.vlgmr.msrb.gmra.mxu1 %v2225_v13 }
 0x103   :  { %633 = vmatmul.bf16.gmra.mxu2 %v2234_v16 }
 0x10c   :  { %544 = vmatmul.bf16.gmra.mxu1 %v2243_v19 }
 0x113   :  { %638 = vmatmul.bf16.gmra.mxu2 %v2252_v22 }
 0x11c   :  { %549 = vmatmul.bf16.gmra.mxu1 %v2261_v25 }
 0x123   :  { %643 = vmatmul.bf16.gmra.mxu2 %v2270_v28 }
 0x12c   :  { %554 = vmatmul.bf16.gmra.mxu1 %v2279_v31 }
 0x133   :  { %648 = vmatmul.bf16.gmra.mxu2 %v2288_v34 }
 0x13c   :  { %559 = vmatmul.bf16.gmra.mxu1 %v2297_v37 }
 0x143   :  { %653 = vmatmul.bf16.gmra.mxu2 %v2306_v40 }
 0x14c   :  { %564 = vmatmul.bf16.gmra.mxu1 %v2318_v44 }
 0x153   :  { %658 = vmatmul.bf16.gmra.mxu2 %v2330_v48 }
 0x15c   :  { %569 = vmatmul.bf16.gmra.mxu1 %v2345_v53 }
 0x163   :  { %663 = vmatmul.bf16.gmra.mxu2 %v2360_v58 }
 0x16c   :  { %574 = vmatmul.bf16.gmra.mxu1 %v2375_v63 }
 0x173   :  { %668 = vmatmul.bf16.gmra.mxu2 %v2384_v2 }
 0x176   :  { %v629_v5 = vpop.f32.mrf.mxu2 }
 0x179   :  { %v540_v7 = vpop.f32.mrf.mxu1 }
 0x17a   :  { %v541_v12 = vadd.f32 %v2398_v9, %v540_v7  ;;  %v2011_v7 = vld [vmem:[%s2870_s0 + $0xb4] sm:$0xf0] }
 0x17c   :  { %579 = vmatmul.bf16.gmra.mxu1 %v2393_v6  ;;  %v630_v18 = vadd.f32 %v629_v5, %v541_v12  ;;  %v1830_v5 = vld [vmem:[%s2870_s0 + $0xb0] sm:$0xf] }
 0x17e   :  { %v631_v14 = vpop.f32.mrf.mxu2  ;;  %v709_v26 = vmax.f32 %v630_v18, 0.0 }
 0x181   :  { %v542_v17 = vpop.f32.mrf.mxu1 }
 0x182   :  { %v543_v20 = vadd.f32 %v2398_v9, %v542_v17  ;;  %v2458_v17 = vor.u32 %v2011_v7, %v1830_v5 }
 0x183   :  { %673 = vmatmul.bf16.gmra.mxu2 %v2408_v15 }
 0x184   :  { %v632_v21 = vadd.f32 %v631_v14, %v543_v20  ;;  %v2012_v20 = vld [vmem:[%s2870_s0 + $0xc4] sm:$0xf] }
 0x186   :  { %v710_v27 = vmax.f32 %v632_v21, 0.0  ;;  %v634_v29 = vpop.f32.mrf.mxu2  ;;  %v1840_v21 = vld [vmem:[%s2870_s0 + $0xc8] sm:$0xf0] }
 0x188   :  { %v741_v30 = vpack.c.bf16 %v710_v27, %v709_v26  ;;  %v2468_v26 = vor.u32 %v2012_v20, %v1840_v21 }
 0x189   :  { %v545_v33 = vpop.f32.mrf.mxu1 }
 0x18a   :  { %829 = vmatmul.bf16.vlgmr.msrb.gmra.mxu3 %v741_v30  ;;  %v546_v38 = vadd.f32 %v2398_v9, %v545_v33 }
 0x18c   :  { %584 = vmatmul.bf16.gmra.mxu1 %v2418_v32  ;;  %v635_v43 = vadd.f32 %v634_v29, %v546_v38 }
 0x18e   :  { %v636_v39 = vpop.f32.mrf.mxu2  ;;  %v711_v50 = vmax.f32 %v635_v43, 0.0 }
 0x191   :  { %v547_v42 = vpop.f32.mrf.mxu1 }
 0x192   :  { %v548_v45 = vadd.f32 %v2398_v9, %v547_v42 }
 0x193   :  { %678 = vmatmul.bf16.gmra.mxu2 %v2428_v41 }
 0x194   :  { %v637_v46 = vadd.f32 %v636_v39, %v548_v45  ;;  %v2478_v45 = vor.u32 %v2013_v36, %v1838_v35 }
 0x196   :  { %v639_v51 = vpop.f32.mrf.mxu2  ;;  %v712_v52 = vmax.f32 %v637_v46, 0.0 }
 0x198   :  { %v742_v54 = vpack.c.bf16 %v712_v52, %v711_v50  ;;  %v2488_v52 = vor.u32 %v2014_v47, %v1848_v49 }
 0x199   :  { %v550_v56 = vpop.f32.mrf.mxu1 }
 0x19a   :  { %834 = vmatmul.bf16.gmra.mxu3 %v742_v54  ;;  %v551_v60 = vadd.f32 %v2398_v9, %v550_v56 }
 0x19c   :  { %589 = vmatmul.bf16.gmra.mxu1 %v2438_v55  ;;  %v640_v1 = vadd.f32 %v639_v51, %v551_v60  ;;  %v1846_v60 = vld [vmem:[%s2870_s0 + $0xd0] sm:$0xf] }
 0x19e   :  { %v641_v61 = vpop.f32.mrf.mxu2  ;;  %v713_v10 = vmax.f32 %v640_v1, 0.0 }
 0x1a1   :  { %v552_v0 = vpop.f32.mrf.mxu1 }
 0x1a2   :  { %v553_v3 = vadd.f32 %v2398_v9, %v552_v0 }
 0x1a3   :  { %683 = vmatmul.bf16.gmra.mxu2 %v2448_v62 }
 0x1a4   :  { %v642_v4 = vadd.f32 %v641_v61, %v553_v3  ;;  %v2015_v61 = vld [vmem:[%s2870_s0 + $0xd4] sm:$0xf0] }
 0x1a5   :  { %v2498_v5 = vor.u32 %v2015_v61, %v1846_v60 }
 0x1a6   :  { %v644_v11 = vpop.f32.mrf.mxu2  ;;  %v714_v12 = vmax.f32 %v642_v4, 0.0 }
 0x1a8   :  { %v743_v14 = vpack.c.bf16 %v714_v12, %v713_v10  ;;  %v2016_v10 = vld [vmem:[%s2870_s0 + $0xe4] sm:$0xf] }
 0x1a9   :  { %v555_v18 = vpop.f32.mrf.mxu1 }
 0x1aa   :  { %839 = vmatmul.bf16.gmra.mxu3 %v743_v14  ;;  %v556_v23 = vadd.f32 %v2398_v9, %v555_v18 }
 0x1ac   :  { %594 = vmatmul.bf16.gmra.mxu1 %v2458_v17  ;;  %v645_v29 = vadd.f32 %v644_v11, %v556_v23  ;;  %v1856_v11 = vld [vmem:[%s2870_s0 + $0xe8] sm:$0xf0] }
 0x1ad   :  { %v2508_v18 = vor.u32 %v2016_v10, %v1856_v11 }
 0x1ae   :  { %v646_v24 = vpop.f32.mrf.mxu2  ;;  %v715_v38 = vmax.f32 %v645_v29, 0.0  ;;  %v2017_v29 = vld [vmem:[%s2870_s0 + $0xe4] sm:$0xf0] }
 0x1b1   :  { %v557_v27 = vpop.f32.mrf.mxu1 }
 0x1b2   :  { %v558_v30 = vadd.f32 %v2398_v9, %v557_v27  ;;  %v1854_v27 = vld [vmem:[%s2870_s0 + $0xe0] sm:$0xf] }
 0x1b3   :  { %688 = vmatmul.bf16.gmra.mxu2 %v2468_v26 }
 0x1b4   :  { %v647_v33 = vadd.f32 %v646_v24, %v558_v30 }
 0x1b6   :  { %v649_v39 = vpop.f32.mrf.mxu2  ;;  %v716_v42 = vmax.f32 %v647_v33, 0.0 }
 0x1b8   :  { %v744_v43 = vpack.c.bf16 %v716_v42, %v715_v38  ;;  %v2518_v38 = vor.u32 %v2017_v29, %v1854_v27  ;;  %v2018_v42 = vld [vmem:[%s2870_s0 + $0xf4] sm:$0xf] }
 0x1b9   :  { %v560_v46 = vpop.f32.mrf.mxu1 }
 0x1ba   :  { %844 = vmatmul.bf16.gmra.mxu3 %v744_v43  ;;  %v561_v50 = vadd.f32 %v2398_v9, %v560_v46  ;;  %v1864_v43 = vld [vmem:[%s2870_s0 + $0xf8] sm:$0xf0] }
 0x1bb   :  { %v2528_v49 = vor.u32 %v2018_v42, %v1864_v43 }
 0x1bc   :  { %599 = vmatmul.bf16.gmra.mxu1 %v2478_v45  ;;  %v650_v56 = vadd.f32 %v649_v39, %v561_v50 }
 0x1be   :  { %v651_v51 = vpop.f32.mrf.mxu2  ;;  %v717_v0 = vmax.f32 %v650_v56, 0.0 }
 0x1c1   :  { %v562_v54 = vpop.f32.mrf.mxu1 }
 0x1c2   :  { %v563_v57 = vadd.f32 %v2398_v9, %v562_v54 }
 0x1c3   :  { %693 = vmatmul.bf16.gmra.mxu2 %v2488_v52 }
 0x1c4   :  { %v652_v59 = vadd.f32 %v651_v51, %v563_v57  ;;  %v1862_v57 = vld [vmem:[%s2870_s0 + $0xf0] sm:$0xf] }
 0x1c6   :  { %v654_v1 = vpop.f32.mrf.mxu2  ;;  %v718_v3 = vmax.f32 %v652_v59, 0.0  ;;  %v2019_v59 = vld [vmem:[%s2870_s0 + $0xf4] sm:$0xf0] }
 0x1c8   :  { %v745_v4 = vpack.c.bf16 %v718_v3, %v717_v0  ;;  %v2538_v3 = vor.u32 %v2019_v59, %v1862_v57 }
 0x1c9   :  { %v565_v7 = vpop.f32.mrf.mxu1 }
 0x1ca   :  { %849 = vmatmul.bf16.gmra.mxu3 %v745_v4  ;;  %v566_v12 = vadd.f32 %v2398_v9, %v565_v7 }
 0x1cc   :  { %604 = vmatmul.bf16.gmra.mxu1 %v2498_v5  ;;  %v655_v21 = vadd.f32 %v654_v1, %v566_v12 }
 0x1ce   :  { %v656_v14 = vpop.f32.mrf.mxu2  ;;  %v719_v30 = vmax.f32 %v655_v21, 0.0 }
 0x1d1   :  { %v567_v20 = vpop.f32.mrf.mxu1 }
 0x1d2   :  { %v568_v23 = vadd.f32 %v2398_v9, %v567_v20 }
 0x1d3   :  { %698 = vmatmul.bf16.gmra.mxu2 %v2508_v18 }
 0x1d4   :  { %v657_v24 = vadd.f32 %v656_v14, %v568_v23 }
 0x1d6   :  { %v659_v33 = vpop.f32.mrf.mxu2  ;;  %v720_v35 = vmax.f32 %v657_v24, 0.0 }
 0x1d8   :  { %v746_v36 = vpack.c.bf16 %v720_v35, %v719_v30 }
 0x1d9   :  { %v570_v39 = vpop.f32.mrf.mxu1 }
 0x1da   :  { %854 = vmatmul.bf16.gmra.mxu3 %v746_v36  ;;  %v571_v46 = vadd.f32 %v2398_v9, %v570_v39 }
 0x1dc   :  { %609 = vmatmul.bf16.gmra.mxu1 %v2518_v38  ;;  %v660_v51 = vadd.f32 %v659_v33, %v571_v46 }
 0x1de   :  { %v661_v47 = vpop.f32.mrf.mxu2  ;;  %v721_v60 = vmax.f32 %v660_v51, 0.0 }
 0x1e1   :  { %v572_v50 = vpop.f32.mrf.mxu1 }
 0x1e2   :  { %v573_v54 = vadd.f32 %v2398_v9, %v572_v50 }
 0x1e3   :  { %703 = vmatmul.bf16.gmra.mxu2 %v2528_v49 }
 0x1e4   :  { %v662_v56 = vadd.f32 %v661_v47, %v573_v54 }
 0x1e6   :  { %v664_v61 = vpop.f32.mrf.mxu2  ;;  %v722_v0 = vmax.f32 %v662_v56, 0.0 }
 0x1e8   :  { %v747_v1 = vpack.c.bf16 %v722_v0, %v721_v60 }
 0x1e9   :  { %v575_v4 = vpop.f32.mrf.mxu1 }
 0x1ea   :  { %859 = vmatmul.bf16.gmra.mxu3 %v747_v1  ;;  %v576_v7 = vadd.f32 %v2398_v9, %v575_v4 }
 0x1ec   :  { %614 = vmatmul.bf16.gmra.mxu1 %v2538_v3  ;;  %v665_v12 = vadd.f32 %v664_v61, %v576_v7 }
 0x1ee   :  { %v666_v10 = vpop.f32.mrf.mxu2  ;;  %v723_v21 = vmax.f32 %v665_v12, 0.0 }
 0x1f1   :  { %v577_v11 = vpop.f32.mrf.mxu1 }
 0x1f2   :  { %v578_v14 = vadd.f32 %v2398_v9, %v577_v11 }
 0x1f4   :  { %v667_v20 = vadd.f32 %v666_v10, %v578_v14 }
 0x1f6   :  { %v669_v23 = vpop.f32.mrf.mxu2  ;;  %v724_v24 = vmax.f32 %v667_v20, 0.0 }
 0x1f8   :  { %v748_v27 = vpack.c.bf16 %v724_v24, %v723_v21 }
 0x1f9   :  { %v580_v29 = vpop.f32.mrf.mxu1 }
 0x1fa   :  { %864 = vmatmul.bf16.gmra.mxu3 %v748_v27  ;;  %v581_v30 = vadd.f32 %v2398_v9, %v580_v29 }
 0x1fc   :  { %v670_v36 = vadd.f32 %v669_v23, %v581_v30 }
 0x1fe   :  { %v671_v33 = vpop.f32.mrf.mxu2  ;;  %v725_v43 = vmax.f32 %v670_v36, 0.0 }
 0x201   :  { %v582_v35 = vpop.f32.mrf.mxu1 }
 0x202   :  { %v583_v39 = vadd.f32 %v2398_v9, %v582_v35 }
 0x204   :  { %v672_v42 = vadd.f32 %v671_v33, %v583_v39 }
 0x206   :  { %v674_v46 = vpop.f32.mrf.mxu2  ;;  %v726_v47 = vmax.f32 %v672_v42, 0.0 }
 0x208   :  { %v749_v50 = vpack.c.bf16 %v726_v47, %v725_v43 }
 0x209   :  { %v585_v51 = vpop.f32.mrf.mxu1 }
 0x20a   :  { %869 = vmatmul.bf16.gmra.mxu3 %v749_v50  ;;  %v586_v56 = vadd.f32 %v2398_v9, %v585_v51 }
 0x20c   :  { %v675_v60 = vadd.f32 %v674_v46, %v586_v56 }
 0x20d   :  { %v2545_v54 = vpop.f32.mrf.mxu3 }
 0x20e   :  { %v676_v57 = vpop.f32.mrf.mxu2  ;;  %v727_v4 = vmax.f32 %v675_v60, 0.0 }
 0x211   :  { %v587_v59 = vpop.f32.mrf.mxu1 }
 0x212   :  { %v588_v61 = vadd.f32 %v2398_v9, %v587_v59 }
 0x214   :  { %v677_v0 = vadd.f32 %v676_v57, %v588_v61 }
 0x215   :  { %v2549_v1 = vpop.f32.mrf.mxu3 }
 0x216   :  { %v728_v7 = vmax.f32 %v677_v0, 0.0  ;;  %v679_v10 = vpop.f32.mrf.mxu2 }
 0x218   :  { %v750_v12 = vpack.c.bf16 %v728_v7, %v727_v4 }
 0x219   :  { %v590_v14 = vpop.f32.mrf.mxu1 }
 0x21a   :  { %874 = vmatmul.bf16.gmra.mxu3 %v750_v12  ;;  %v591_v21 = vadd.f32 %v2398_v9, %v590_v14 }
 0x21c   :  { %v680_v27 = vadd.f32 %v679_v10, %v591_v21 }
 0x21d   :  { %v2553_v20 = vpop.f32.mrf.mxu3 }
 0x21e   :  { %v681_v23 = vpop.f32.mrf.mxu2  ;;  %v729_v35 = vmax.f32 %v680_v27, 0.0 }
 0x221   :  { %v592_v24 = vpop.f32.mrf.mxu1 }
 0x222   :  { %v593_v29 = vadd.f32 %v2398_v9, %v592_v24 }
 0x224   :  { %v682_v30 = vadd.f32 %v681_v23, %v593_v29 }
 0x225   :  { %v2557_v33 = vpop.f32.mrf.mxu3 }
 0x226   :  { %v730_v36 = vmax.f32 %v682_v30, 0.0  ;;  %v684_v39 = vpop.f32.mrf.mxu2 }
 0x228   :  { %v751_v43 = vpack.c.bf16 %v730_v36, %v729_v35 }
 0x229   :  { %v595_v46 = vpop.f32.mrf.mxu1 }
 0x22a   :  { %879 = vmatmul.bf16.gmra.mxu3 %v751_v43  ;;  %v596_v50 = vadd.f32 %v2398_v9, %v595_v46 }
 0x22c   :  { %v685_v57 = vadd.f32 %v684_v39, %v596_v50 }
 0x22d   :  { %v2561_v47 = vpop.f32.mrf.mxu3 }
 0x22e   :  { %v686_v51 = vpop.f32.mrf.mxu2  ;;  %v731_v0 = vmax.f32 %v685_v57, 0.0 }
 0x231   :  { %v597_v56 = vpop.f32.mrf.mxu1 }
 0x232   :  { %v598_v59 = vadd.f32 %v2398_v9, %v597_v56 }
 0x234   :  { %v687_v60 = vadd.f32 %v686_v51, %v598_v59 }
 0x235   :  { %v2565_v61 = vpop.f32.mrf.mxu3 }
 0x236   :  { %v732_v4 = vmax.f32 %v687_v60, 0.0  ;;  %v689_v7 = vpop.f32.mrf.mxu2  ;;  %v912_v10 = vpack.c.bf16 %v2565_v61, %v2561_v47 }
 0x238   :  { %v752_v12 = vpack.c.bf16 %v732_v4, %v731_v0 }
 0x239   :  { %v600_v14 = vpop.f32.mrf.mxu1 }
 0x23a   :  { %884 = vmatmul.bf16.gmra.mxu3 %v752_v12  ;;  %v601_v23 = vadd.f32 %v2398_v9, %v600_v14 }
 0x23c   :  { %v690_v29 = vadd.f32 %v689_v7, %v601_v23 }
 0x23d   :  { %v2569_v21 = vpop.f32.mrf.mxu3 }
 0x23e   :  { %v691_v24 = vpop.f32.mrf.mxu2  ;;  %v733_v39 = vmax.f32 %v690_v29, 0.0 }
 0x241   :  { %v602_v27 = vpop.f32.mrf.mxu1 }
 0x242   :  { %v603_v30 = vadd.f32 %v2398_v9, %v602_v27 }
 0x244   :  { %v692_v35 = vadd.f32 %v691_v24, %v603_v30 }
 0x245   :  { %v847_v36 = vpop.f32.mrf.mxu3 }
 0x246   :  { %v734_v43 = vmax.f32 %v692_v35, 0.0  ;;  %v694_v46 = vpop.f32.mrf.mxu2  ;;  %v913_v50 = vpack.c.bf16 %v847_v36, %v2569_v21 }
 0x248   :  { %v753_v51 = vpack.c.bf16 %v734_v43, %v733_v39 }
 0x249   :  { %v605_v56 = vpop.f32.mrf.mxu1 }
 0x24a   :  { %889 = vmatmul.bf16.gmra.mxu3 %v753_v51  ;;  %v606_v59 = vadd.f32 %v2398_v9, %v605_v56 }
 0x24c   :  { %v695_v4 = vadd.f32 %v694_v46, %v606_v59 }
 0x24d   :  { %v850_v57 = vpop.f32.mrf.mxu3 }
 0x24e   :  { %v696_v60 = vpop.f32.mrf.mxu2  ;;  %v735_v23 = vmax.f32 %v695_v4, 0.0 }
 0x251   :  { %v607_v0 = vpop.f32.mrf.mxu1 }
 0x252   :  { %v608_v7 = vadd.f32 %v2398_v9, %v607_v0 }
 0x254   :  { %v697_v12 = vadd.f32 %v696_v60, %v608_v7 }
 0x255   :  { %v852_v14 = vpop.f32.mrf.mxu3 }
 0x256   :  { %v736_v24 = vmax.f32 %v697_v12, 0.0  ;;  %v699_v27 = vpop.f32.mrf.mxu2 }
 0x258   :  { %v754_v29 = vpack.c.bf16 %v736_v24, %v735_v23 }
 0x259   :  { %v610_v30 = vpop.f32.mrf.mxu1 }
 0x25a   :  { %894 = vmatmul.bf16.gmra.mxu3 %v754_v29  ;;  %v611_v35 = vadd.f32 %v2398_v9, %v610_v30 }
 0x25c   :  { %v700_v43 = vadd.f32 %v699_v27, %v611_v35 }
 0x25d   :  { %v855_v21 = vpop.f32.mrf.mxu3 }
 0x25e   :  { %v701_v36 = vpop.f32.mrf.mxu2  ;;  %v737_v59 = vmax.f32 %v700_v43, 0.0 }
 0x261   :  { %v612_v39 = vpop.f32.mrf.mxu1 }
 0x262   :  { %v613_v51 = vadd.f32 %v2398_v9, %v612_v39 }
 0x264   :  { %v702_v56 = vadd.f32 %v701_v36, %v613_v51 }
 0x265   :  { %v857_v46 = vpop.f32.mrf.mxu3 }
 0x266   :  { %v738_v0 = vmax.f32 %v702_v56, 0.0  ;;  %v704_v7 = vpop.f32.mrf.mxu2 }
 0x268   :  { %v755_v60 = vpack.c.bf16 %v738_v0, %v737_v59 }
 0x269   :  { %v615_v4 = vpop.f32.mrf.mxu1 }
 0x26a   :  { %899 = vmatmul.bf16.gmra.mxu3 %v755_v60  ;;  %v616_v23 = vadd.f32 %v2398_v9, %v615_v4  ;;  %v915_v60 = vpack.c.bf16 %v857_v46, %v855_v21  ;;  %v914_v4 = vpack.c.bf16 %v852_v14, %v850_v57 }
 0x26c   :  { %v705_v29 = vadd.f32 %v704_v7, %v616_v23 }
 0x26d   :  { %v860_v12 = vpop.f32.mrf.mxu3 }
 0x26e   :  { %v706_v11 = vpop.f32.mrf.mxu2  ;;  %v739_v35 = vmax.f32 %v705_v29, 0.0 }
 0x271   :  { %v617_v24 = vpop.f32.mrf.mxu1 }
 0x272   :  { %v618_v30 = vadd.f32 %v2398_v9, %v617_v24 }
 0x274   :  { %v707_v42 = vadd.f32 %v706_v11, %v618_v30  ;;  %v2880_v11 = vpack.c.bf16 %v2557_v33, %v2553_v20 }
 0x275   :  { %v862_v27 = vpop.f32.mrf.mxu3 }
 0x276   :  { %v740_v39 = vmax.f32 %v707_v42, 0.0  ;;  %v916_v59 = vpack.c.bf16 %v862_v27, %v860_v12  ;;  %v2881_v42 = vpack.c.bf16 %v2549_v1, %v2545_v54 }
 0x278   :  { %v756_v36 = vpack.c.bf16 %v740_v39, %v739_v35 }
 0x27a   :  { %904 = vmatmul.bf16.gmra.mxu3 %v756_v36 }
 0x27d   :  { %v865_v43 = vpop.f32.mrf.mxu3 }
 0x285   :  { %v867_v51 = vpop.f32.mrf.mxu3 }
 0x286   :  { %v917_v56 = vpack.c.bf16 %v867_v51, %v865_v43  ;;  %v2035_v43 = vld [vmem:[%s2874_s7 + $0x38] sm:$0xff]  ;;  %v2034_v51 = vld [vmem:[%s2874_s7 + $0x30] sm:$0xff] }
 0x287   :  { %1220 = vmatpush.bf16.msra.mxu2 %v2035_v43 }
 0x288   :  { %930 = vmatpush.bf16.msrb.mxu0 %v917_v56 }
 0x28b   :  { %1221 = vmatpush.bf16.msra.mxu2 %v2034_v51 }
 0x28c   :  { %931 = vmatpush.bf16.msrb.mxu0 %v916_v59  ;;  %v2033_v59 = vld [vmem:[%s2874_s7 + $0x28] sm:$0xff] }
 0x28d   :  { %v870_v0 = vpop.f32.mrf.mxu3 }
 0x28f   :  { %1222 = vmatpush.bf16.msra.mxu2 %v2033_v59 }
 0x290   :  { %932 = vmatpush.bf16.msrb.mxu0 %v915_v60 }
 0x294   :  { %933 = vmatpush.bf16.msrb.mxu0 %v914_v4  ;;  %v2031_v4 = vld [vmem:[%s2874_s7 + $0x18] sm:$0xff] }
 0x295   :  { %v872_v7 = vpop.f32.mrf.mxu3 }
 0x296   :  { %v918_v36 = vpack.c.bf16 %v872_v7, %v870_v0  ;;  %v2032_v0 = vld [vmem:[%s2874_s7 + $0x20] sm:$0xff]  ;;  %v2030_v7 = vld [vmem:[%s2874_s7 + $0x10] sm:$0xff] }
 0x297   :  { %1223 = vmatpush.bf16.msra.mxu2 %v2032_v0 }
 0x298   :  { %934 = vmatpush.bf16.msrb.mxu0 %v913_v50 }
 0x29b   :  { %1224 = vmatpush.bf16.msra.mxu2 %v2031_v4 }
 0x29c   :  { %935 = vmatpush.bf16.msrb.mxu0 %v912_v10 }
 0x29d   :  { %v875_v9 = vpop.f32.mrf.mxu3 }
 0x29f   :  { %1225 = vmatpush.bf16.msra.mxu2 %v2030_v7 }
 0x2a0   :  { %936 = vmatpush.bf16.msrb.mxu0 %v2880_v11  ;;  %v2029_v11 = vld [vmem:[%s2874_s7 + $0x8] sm:$0xff] }
 0x2a3   :  { %1226 = vmatpush.bf16.msra.mxu2 %v2029_v11 }
 0x2a4   :  { %937 = vmatpush.bf16.msrb.mxu0 %v2881_v42  ;;  %v2028_v42 = vld [vmem:[%s2874_s7] sm:$0xff] }
 0x2a5   :  { %v877_v12 = vpop.f32.mrf.mxu3 }
 0x2a6   :  { %v919_v39 = vpack.c.bf16 %v877_v12, %v875_v9 }
 0x2a7   :  { %938 = vmatmul.bf16.vlgmr.msrb.gmra.mxu0 %v2225_v13  ;;  %1227 = vmatpush.bf16.msra.mxu2 %v2028_v42 }
 0x2ad   :  { %v880_v57 = vpop.f32.mrf.mxu3 }
 0x2b5   :  { %v882_v14 = vpop.f32.mrf.mxu3 }
 0x2b6   :  { %v920_v35 = vpack.c.bf16 %v882_v14, %v880_v57 }
 0x2b7   :  { %943 = vmatmul.bf16.gmra.mxu0 %v2243_v19 }
 0x2bd   :  { %v885_v50 = vpop.f32.mrf.mxu3 }
 0x2c5   :  { %v887_v21 = vpop.f32.mrf.mxu3 }
 0x2c6   :  { %v921_v27 = vpack.c.bf16 %v887_v21, %v885_v50  ;;  %v2639_v50 = vld [vmem:[%s2873_s6] ss:$0 sm:$0xff] }
 0x2c7   :  { %948 = vmatmul.bf16.gmra.mxu0 %v2261_v25 }
 0x2cd   :  { %v890_v47 = vpop.f32.mrf.mxu3 }
 0x2d5   :  { %v892_v61 = vpop.f32.mrf.mxu3 }
 0x2d6   :  { %v922_v30 = vpack.c.bf16 %v892_v61, %v890_v47 }
 0x2d7   :  { %953 = vmatmul.bf16.gmra.mxu0 %v2279_v31 }
 0x2dd   :  { %v895_v20 = vpop.f32.mrf.mxu3 }
 0x2e5   :  { %v897_v33 = vpop.f32.mrf.mxu3 }
 0x2e6   :  { %v923_v29 = vpack.c.bf16 %v897_v33, %v895_v20 }
 0x2e7   :  { %958 = vmatmul.bf16.gmra.mxu0 %v2297_v37 }
 0x2ed   :  { %v900_v54 = vpop.f32.mrf.mxu3 }
 0x2f5   :  { %v902_v1 = vpop.f32.mrf.mxu3 }
 0x2f6   :  { %v924_v24 = vpack.c.bf16 %v902_v1, %v900_v54 }
 0x2f7   :  { %963 = vmatmul.bf16.gmra.mxu0 %v2318_v44 }
 0x2fd   :  { %v905_v10 = vpop.f32.mrf.mxu3 }
 0x305   :  { %v907_v46 = vpop.f32.mrf.mxu3 }
 0x306   :  { %v925_v23 = vpack.c.bf16 %v907_v46, %v905_v10 }
 0x307   :  { %968 = vmatmul.bf16.gmra.mxu0 %v2345_v53 }
 0x308   :  { %1019 = vmatpush.bf16.msra.mxu1 %v925_v23 }
 0x30c   :  { %1020 = vmatpush.bf16.msra.mxu1 %v924_v24 }
 0x310   :  { %1021 = vmatpush.bf16.msra.mxu1 %v923_v29 }
 0x314   :  { %1022 = vmatpush.bf16.msra.mxu1 %v922_v30 }
 0x317   :  { %973 = vmatmul.bf16.gmra.mxu0 %v2375_v63 }
 0x318   :  { %1023 = vmatpush.bf16.msra.mxu1 %v921_v27 }
 0x31c   :  { %1024 = vmatpush.bf16.msra.mxu1 %v920_v35 }
 0x320   :  { %1025 = vmatpush.bf16.msra.mxu1 %v919_v39 }
 0x324   :  { %1026 = vmatpush.bf16.msra.mxu1 %v918_v36  ;;  %v939_v56 = vpop.f32.mrf.mxu0 }
 0x325   :  { %v940_v47 = vadd.f32 %v2639_v50, %v939_v56 }
 0x327   :  { %1027 = vmatmul.bf16.vlgmr.msra.gmra.mxu1 %v2214_v8  ;;  %978 = vmatmul.bf16.gmra.mxu0 %v2393_v6 }
 0x32c   :  { %v941_v60 = vpop.f32.mrf.mxu0 }
 0x32d   :  { %v942_v20 = vadd.f32 %v2639_v50, %v941_v60 }
 0x334   :  { %v944_v9 = vpop.f32.mrf.mxu0 }
 0x335   :  { %v945_v30 = vadd.f32 %v2639_v50, %v944_v9 }
 0x337   :  { %1032 = vmatmul.bf16.gmra.mxu1 %v2234_v16  ;;  %983 = vmatmul.bf16.gmra.mxu0 %v2418_v32 }
 0x33c   :  { %v946_v12 = vpop.f32.mrf.mxu0 }
 0x33d   :  { %v947_v35 = vadd.f32 %v2639_v50, %v946_v12 }
 0x344   :  { %v949_v57 = vpop.f32.mrf.mxu0 }
 0x345   :  { %v950_v4 = vadd.f32 %v2639_v50, %v949_v57 }
 0x347   :  { %1037 = vmatmul.bf16.gmra.mxu1 %v2252_v22  ;;  %988 = vmatmul.bf16.gmra.mxu0 %v2438_v55 }
 0x34c   :  { %v951_v14 = vpop.f32.mrf.mxu0 }
 0x34d   :  { %v952_v9 = vadd.f32 %v2639_v50, %v951_v14 }
 0x354   :  { %v954_v61 = vpop.f32.mrf.mxu0 }
 0x357   :  { %1042 = vmatmul.bf16.gmra.mxu1 %v2270_v28  ;;  %993 = vmatmul.bf16.gmra.mxu0 %v2458_v17 }
 0x35c   :  { %v956_v24 = vpop.f32.mrf.mxu0 }
 0x35d   :  { %v957_v57 = vadd.f32 %v2639_v50, %v956_v24 }
 0x364   :  { %v959_v27 = vpop.f32.mrf.mxu0 }
 0x367   :  { %1047 = vmatmul.bf16.gmra.mxu1 %v2288_v34  ;;  %998 = vmatmul.bf16.gmra.mxu0 %v2478_v45 }
 0x36c   :  { %v961_v0 = vpop.f32.mrf.mxu0 }
 0x374   :  { %v964_v7 = vpop.f32.mrf.mxu0 }
 0x377   :  { %1052 = vmatmul.bf16.gmra.mxu1 %v2306_v40  ;;  %1003 = vmatmul.bf16.gmra.mxu0 %v2498_v5 }
 0x387   :  { %1057 = vmatmul.bf16.gmra.mxu1 %v2330_v48  ;;  %1008 = vmatmul.bf16.gmra.mxu0 %v2518_v38 }
 0x397   :  { %1062 = vmatmul.bf16.gmra.mxu1 %v2360_v58  ;;  %1013 = vmatmul.bf16.gmra.mxu0 %v2538_v3 }
 0x3a4   :  { %v1028_v21 = vpop.f32.mrf.mxu1 }
 0x3a5   :  { %v1029_v33 = vadd.f32 %v1028_v21, %v940_v47 }
 0x3a7   :  { %1067 = vmatmul.bf16.gmra.mxu1 %v2384_v2  ;;  %v1108_v10 = vmax.f32 %v1029_v33, 0.0  ;;  %v966_v33 = vpop.f32.mrf.mxu0 }
 0x3ac   :  { %v1030_v54 = vpop.f32.mrf.mxu1 }
 0x3ad   :  { %v1031_v1 = vadd.f32 %v1030_v54, %v942_v20 }
 0x3af   :  { %v1109_v46 = vmax.f32 %v1031_v1, 0.0  ;;  %v955_v1 = vadd.f32 %v2639_v50, %v954_v61  ;;  %v962_v61 = vadd.f32 %v2639_v50, %v961_v0 }
 0x3b1   :  { %v1140_v23 = vpack.c.bf16 %v1109_v46, %v1108_v10  ;;  %v969_v10 = vpop.f32.mrf.mxu0 }
 0x3b3   :  { %1228 = vmatmul.bf16.vlgmr.msra.gmra.mxu2 %v1140_v23 }
 0x3b4   :  { %v1033_v29 = vpop.f32.mrf.mxu1 }
 0x3b5   :  { %v1034_v39 = vadd.f32 %v1033_v29, %v945_v30 }
 0x3b7   :  { %1072 = vmatmul.bf16.gmra.mxu1 %v2408_v15  ;;  %v1110_v51 = vmax.f32 %v1034_v39, 0.0 }
 0x3bc   :  { %v1035_v36 = vpop.f32.mrf.mxu1 }
 0x3bd   :  { %v1036_v43 = vadd.f32 %v1035_v36, %v947_v35  ;;  %v971_v36 = vpop.f32.mrf.mxu0 }
 0x3bf   :  { %v1111_v56 = vmax.f32 %v1036_v43, 0.0  ;;  %v960_v43 = vadd.f32 %v2639_v50, %v959_v27  ;;  %v967_v27 = vadd.f32 %v2639_v50, %v966_v33 }
 0x3c1   :  { %v1141_v59 = vpack.c.bf16 %v1111_v56, %v1110_v51 }
 0x3c3   :  { %1233 = vmatmul.bf16.gmra.mxu2 %v1141_v59 }
 0x3c4   :  { %v1038_v60 = vpop.f32.mrf.mxu1 }
 0x3c5   :  { %v1039_v11 = vadd.f32 %v1038_v60, %v950_v4  ;;  %v974_v60 = vpop.f32.mrf.mxu0 }
 0x3c7   :  { %1077 = vmatmul.bf16.gmra.mxu1 %v2428_v41  ;;  %v1112_v12 = vmax.f32 %v1039_v11, 0.0 }
 0x3cc   :  { %v1040_v42 = vpop.f32.mrf.mxu1 }
 0x3cd   :  { %v1041_v21 = vadd.f32 %v1040_v42, %v952_v9  ;;  %v965_v42 = vadd.f32 %v2639_v50, %v964_v7  ;;  %v972_v7 = vadd.f32 %v2639_v50, %v971_v36 }
 0x3cf   :  { %v1113_v47 = vmax.f32 %v1041_v21, 0.0  ;;  %v976_v21 = vpop.f32.mrf.mxu0 }
 0x3d1   :  { %v1142_v20 = vpack.c.bf16 %v1113_v47, %v1112_v12 }
 0x3d3   :  { %1238 = vmatmul.bf16.gmra.mxu2 %v1142_v20 }
 0x3d4   :  { %v1043_v54 = vpop.f32.mrf.mxu1 }
 0x3d5   :  { %v1044_v46 = vadd.f32 %v1043_v54, %v955_v1 }
 0x3d7   :  { %1082 = vmatmul.bf16.gmra.mxu1 %v2448_v62  ;;  %v1114_v14 = vmax.f32 %v1044_v46, 0.0 }
 0x3dc   :  { %v1045_v23 = vpop.f32.mrf.mxu1 }
 0x3dd   :  { %v1046_v29 = vadd.f32 %v1045_v23, %v957_v57  ;;  %v979_v57 = vpop.f32.mrf.mxu0  ;;  %v970_v23 = vadd.f32 %v2639_v50, %v969_v10  ;;  %v977_v10 = vadd.f32 %v2639_v50, %v976_v21 }
 0x3df   :  { %v1115_v30 = vmax.f32 %v1046_v29, 0.0 }
 0x3e1   :  { %v1143_v35 = vpack.c.bf16 %v1115_v30, %v1114_v14 }
 0x3e3   :  { %1243 = vmatmul.bf16.gmra.mxu2 %v1143_v35 }
 0x3e4   :  { %v1048_v39 = vpop.f32.mrf.mxu1 }
 0x3e5   :  { %v1049_v51 = vadd.f32 %v1048_v39, %v960_v43  ;;  %v981_v30 = vpop.f32.mrf.mxu0 }
 0x3e7   :  { %1087 = vmatmul.bf16.gmra.mxu1 %v2468_v26  ;;  %v1116_v24 = vmax.f32 %v1049_v51, 0.0 }
 0x3ec   :  { %v1050_v56 = vpop.f32.mrf.mxu1 }
 0x3ed   :  { %v1051_v59 = vadd.f32 %v1050_v56, %v962_v61  ;;  %v984_v51 = vpop.f32.mrf.mxu0  ;;  %v975_v56 = vadd.f32 %v2639_v50, %v974_v60 }
 0x3ef   :  { %v1117_v4 = vmax.f32 %v1051_v59, 0.0 }
 0x3f1   :  { %v1144_v9 = vpack.c.bf16 %v1117_v4, %v1116_v24 }
 0x3f3   :  { %1248 = vmatmul.bf16.gmra.mxu2 %v1144_v9 }
 0x3f4   :  { %v1053_v11 = vpop.f32.mrf.mxu1 }
 0x3f5   :  { %v1054_v12 = vadd.f32 %v1053_v11, %v965_v42  ;;  %v986_v11 = vpop.f32.mrf.mxu0 }
 0x3f7   :  { %1092 = vmatmul.bf16.gmra.mxu1 %v2488_v52  ;;  %v1118_v0 = vmax.f32 %v1054_v12, 0.0  ;;  %v980_v12 = vadd.f32 %v2639_v50, %v979_v57 }
 0x3fc   :  { %v1055_v47 = vpop.f32.mrf.mxu1 }
 0x3fd   :  { %v1056_v20 = vadd.f32 %v1055_v47, %v967_v27  ;;  %v989_v47 = vpop.f32.mrf.mxu0 }
 0x3ff   :  { %v1119_v54 = vmax.f32 %v1056_v20, 0.0  ;;  %v982_v20 = vadd.f32 %v2639_v50, %v981_v30 }
 0x401   :  { %v1145_v1 = vpack.c.bf16 %v1119_v54, %v1118_v0 }
 0x403   :  { %1253 = vmatmul.bf16.gmra.mxu2 %v1145_v1 }
 0x404   :  { %v1058_v46 = vpop.f32.mrf.mxu1 }
 0x405   :  { %v1059_v29 = vadd.f32 %v1058_v46, %v970_v23 }
 0x407   :  { %1097 = vmatmul.bf16.gmra.mxu1 %v2508_v18  ;;  %v1120_v33 = vmax.f32 %v1059_v29, 0.0 }
 0x40c   :  { %v1060_v14 = vpop.f32.mrf.mxu1 }
 0x40d   :  { %v1061_v35 = vadd.f32 %v1060_v14, %v972_v7  ;;  %v991_v7 = vpop.f32.mrf.mxu0  ;;  %v985_v14 = vadd.f32 %v2639_v50, %v984_v51  ;;  %v990_v51 = vadd.f32 %v2639_v50, %v989_v47 }
 0x40f   :  { %v1121_v39 = vmax.f32 %v1061_v35, 0.0  ;;  %v987_v35 = vadd.f32 %v2639_v50, %v986_v11 }
 0x411   :  { %v1146_v43 = vpack.c.bf16 %v1121_v39, %v1120_v33 }
 0x413   :  { %1258 = vmatmul.bf16.gmra.mxu2 %v1146_v43 }
 0x414   :  { %v1063_v61 = vpop.f32.mrf.mxu1 }
 0x415   :  { %v1064_v59 = vadd.f32 %v1063_v61, %v975_v56  ;;  %v994_v30 = vpop.f32.mrf.mxu0 }
 0x416   :  { %v995_v47 = vadd.f32 %v2639_v50, %v994_v30 }
 0x417   :  { %1102 = vmatmul.bf16.gmra.mxu1 %v2528_v49  ;;  %v1122_v36 = vmax.f32 %v1064_v59, 0.0 }
 0x41c   :  { %v1065_v24 = vpop.f32.mrf.mxu1 }
 0x41d   :  { %v1066_v4 = vadd.f32 %v1065_v24, %v977_v10 }
 0x41f   :  { %v1123_v9 = vmax.f32 %v1066_v4, 0.0 }
 0x421   :  { %v1147_v42 = vpack.c.bf16 %v1123_v9, %v1122_v36  ;;  %v996_v36 = vpop.f32.mrf.mxu0  ;;  %v992_v9 = vadd.f32 %v2639_v50, %v991_v7 }
 0x423   :  { %1263 = vmatmul.bf16.gmra.mxu2 %v1147_v42 }
 0x424   :  { %v1068_v27 = vpop.f32.mrf.mxu1 }
 0x425   :  { %v1069_v0 = vadd.f32 %v1068_v27, %v980_v12 }
 0x427   :  { %v1124_v1 = vmax.f32 %v1069_v0, 0.0 }
 0x42c   :  { %v1070_v60 = vpop.f32.mrf.mxu1 }
 0x42d   :  { %v1071_v54 = vadd.f32 %v1070_v60, %v982_v20 }
 0x42f   :  { %v1125_v46 = vmax.f32 %v1071_v54, 0.0 }
 0x431   :  { %v1148_v21 = vpack.c.bf16 %v1125_v46, %v1124_v1  ;;  %v999_v1 = vpop.f32.mrf.mxu0 }
 0x432   :  { %v1000_v30 = vadd.f32 %v2639_v50, %v999_v1 }
 0x433   :  { %1268 = vmatmul.bf16.gmra.mxu2 %v1148_v21 }
 0x434   :  { %v1073_v23 = vpop.f32.mrf.mxu1 }
 0x435   :  { %v1074_v33 = vadd.f32 %v1073_v23, %v985_v14  ;;  %v997_v23 = vadd.f32 %v2639_v50, %v996_v36 }
 0x436   :  { %v2668_v29 = vpop.f32.mrf.mxu2 }
 0x437   :  { %v1126_v61 = vmax.f32 %v1074_v33, 0.0 }
 0x43c   :  { %v1075_v57 = vpop.f32.mrf.mxu1 }
 0x43d   :  { %v1076_v39 = vadd.f32 %v1075_v57, %v987_v35  ;;  %v1001_v35 = vpop.f32.mrf.mxu0 }
 0x43e   :  { %v2672_v43 = vpop.f32.mrf.mxu2  ;;  %v1002_v36 = vadd.f32 %v2639_v50, %v1001_v35 }
 0x43f   :  { %v1127_v56 = vmax.f32 %v1076_v39, 0.0 }
 0x441   :  { %v1149_v59 = vpack.c.bf16 %v1127_v56, %v1126_v61 }
 0x443   :  { %1273 = vmatmul.bf16.gmra.mxu2 %v1149_v59 }
 0x444   :  { %v1078_v24 = vpop.f32.mrf.mxu1 }
 0x445   :  { %v1079_v11 = vadd.f32 %v1078_v24, %v990_v51 }
 0x446   :  { %v2676_v4 = vpop.f32.mrf.mxu2 }
 0x447   :  { %v1128_v20 = vmax.f32 %v1079_v11, 0.0 }
 0x44c   :  { %v1080_v42 = vpop.f32.mrf.mxu1 }
 0x44d   :  { %v1081_v27 = vadd.f32 %v1080_v42, %v992_v9  ;;  %v1004_v9 = vpop.f32.mrf.mxu0 }
 0x44e   :  { %v2680_v12 = vpop.f32.mrf.mxu2 }
 0x44f   :  { %v1129_v0 = vmax.f32 %v1081_v27, 0.0 }
 0x451   :  { %v1150_v54 = vpack.c.bf16 %v1129_v0, %v1128_v20 }
 0x453   :  { %1278 = vmatmul.bf16.gmra.mxu2 %v1150_v54 }
 0x454   :  { %v1083_v46 = vpop.f32.mrf.mxu1 }
 0x455   :  { %v1084_v7 = vadd.f32 %v1083_v46, %v995_v47  ;;  %v1006_v47 = vpop.f32.mrf.mxu0 }
 0x456   :  { %v2684_v21 = vpop.f32.mrf.mxu2  ;;  %v1007_v1 = vadd.f32 %v2639_v50, %v1006_v47 }
 0x457   :  { %v1130_v39 = vmax.f32 %v1084_v7, 0.0 }
 0x45c   :  { %v1085_v14 = vpop.f32.mrf.mxu1 }
 0x45d   :  { %v1086_v33 = vadd.f32 %v1085_v14, %v997_v23 }
 0x45e   :  { %v2688_v57 = vpop.f32.mrf.mxu2 }
 0x45f   :  { %v1131_v61 = vmax.f32 %v1086_v33, 0.0  ;;  %v1311_v56 = vpack.c.bf16 %v2688_v57, %v2684_v21  ;;  %v1005_v33 = vadd.f32 %v2639_v50, %v1004_v9 }
 0x461   :  { %v1151_v59 = vpack.c.bf16 %v1131_v61, %v1130_v39  ;;  %v1009_v39 = vpop.f32.mrf.mxu0 }
 0x463   :  { %1283 = vmatmul.bf16.gmra.mxu2 %v1151_v59 }
 0x464   :  { %v1088_v24 = vpop.f32.mrf.mxu1 }
 0x465   :  { %v1089_v11 = vadd.f32 %v1088_v24, %v1000_v30 }
 0x466   :  { %v2692_v51 = vpop.f32.mrf.mxu2 }
 0x467   :  { %v1132_v0 = vmax.f32 %v1089_v11, 0.0 }
 0x46c   :  { %v1090_v42 = vpop.f32.mrf.mxu1 }
 0x46d   :  { %v1091_v27 = vadd.f32 %v1090_v42, %v1002_v36  ;;  %v1011_v42 = vpop.f32.mrf.mxu0 }
 0x46e   :  { %v1246_v20 = vpop.f32.mrf.mxu2 }
 0x46f   :  { %v1133_v54 = vmax.f32 %v1091_v27, 0.0  ;;  %v1312_v46 = vpack.c.bf16 %v1246_v20, %v2692_v51  ;;  %v1010_v20 = vadd.f32 %v2639_v50, %v1009_v39 }
 0x471   :  { %v1152_v23 = vpack.c.bf16 %v1133_v54, %v1132_v0  ;;  %v1012_v0 = vadd.f32 %v2639_v50, %v1011_v42 }
 0x473   :  { %1288 = vmatmul.bf16.gmra.mxu2 %v1152_v23 }
 0x474   :  { %v1093_v7 = vpop.f32.mrf.mxu1 }
 0x475   :  { %v1094_v61 = vadd.f32 %v1093_v7, %v1005_v33  ;;  %v1014_v10 = vpop.f32.mrf.mxu0 }
 0x476   :  { %v1249_v14 = vpop.f32.mrf.mxu2 }
 0x477   :  { %v1134_v30 = vmax.f32 %v1094_v61, 0.0 }
 0x47c   :  { %v1095_v35 = vpop.f32.mrf.mxu1 }
 0x47d   :  { %v1096_v59 = vadd.f32 %v1095_v35, %v1007_v1 }
 0x47e   :  { %v1251_v24 = vpop.f32.mrf.mxu2 }
 0x47f   :  { %v1135_v36 = vmax.f32 %v1096_v59, 0.0  ;;  %v1015_v59 = vadd.f32 %v2639_v50, %v1014_v10  ;;  %v1313_v10 = vpack.c.bf16 %v1251_v24, %v1249_v14 }
 0x481   :  { %v1153_v11 = vpack.c.bf16 %v1135_v36, %v1134_v30  ;;  %v1016_v30 = vpop.f32.mrf.mxu0 }
 0x482   :  { %v1017_v36 = vadd.f32 %v2639_v50, %v1016_v30 }
 0x483   :  { %1293 = vmatmul.bf16.gmra.mxu2 %v1153_v11 }
 0x484   :  { %v1098_v51 = vpop.f32.mrf.mxu1 }
 0x485   :  { %v1099_v54 = vadd.f32 %v1098_v51, %v1010_v20 }
 0x486   :  { %v1254_v27 = vpop.f32.mrf.mxu2 }
 0x487   :  { %v1136_v7 = vmax.f32 %v1099_v54, 0.0 }
 0x48c   :  { %v1100_v9 = vpop.f32.mrf.mxu1 }
 0x48d   :  { %v1101_v23 = vadd.f32 %v1100_v9, %v1012_v0 }
 0x48e   :  { %v1256_v47 = vpop.f32.mrf.mxu2 }
 0x48f   :  { %v1137_v33 = vmax.f32 %v1101_v23, 0.0 }
 0x491   :  { %v1154_v1 = vpack.c.bf16 %v1137_v33, %v1136_v7 }
 0x493   :  { %1298 = vmatmul.bf16.gmra.mxu2 %v1154_v1  ;;  %v1314_v1 = vpack.c.bf16 %v1256_v47, %v1254_v27 }
 0x494   :  { %v1103_v61 = vpop.f32.mrf.mxu1 }
 0x495   :  { %v1104_v11 = vadd.f32 %v1103_v61, %v1015_v59  ;;  %v2882_v59 = vpack.c.bf16 %v2680_v12, %v2676_v4 }
 0x496   :  { %v1259_v35 = vpop.f32.mrf.mxu2 }
 0x497   :  { %v1138_v51 = vmax.f32 %v1104_v11, 0.0 }
 0x49c   :  { %v1105_v39 = vpop.f32.mrf.mxu1 }
 0x49d   :  { %v1106_v60 = vadd.f32 %v1105_v39, %v1017_v36 }
 0x49e   :  { %v1261_v42 = vpop.f32.mrf.mxu2 }
 0x49f   :  { %v1139_v20 = vmax.f32 %v1106_v60, 0.0  ;;  %v1315_v7 = vpack.c.bf16 %v1261_v42, %v1259_v35  ;;  %v2883_v35 = vpack.c.bf16 %v2672_v43, %v2668_v29 }
 0x4a1   :  { %v1155_v0 = vpack.c.bf16 %v1139_v20, %v1138_v51 }
 0x4a3   :  { %1303 = vmatmul.bf16.gmra.mxu2 %v1155_v0 }
 0x4a6   :  { %v1264_v9 = vpop.f32.mrf.mxu2 }
 0x4ae   :  { %v1266_v54 = vpop.f32.mrf.mxu2 }
 0x4af   :  { %v1316_v23 = vpack.c.bf16 %v1266_v54, %v1264_v9 }
 0x4b1   :  { %1329 = vmatpush.bf16.msra.mxu3 %v1316_v23 }
 0x4b5   :  { %1330 = vmatpush.bf16.msra.mxu3 %v1315_v7 }
 0x4b6   :  { %v1269_v33 = vpop.f32.mrf.mxu2 }
 0x4b9   :  { %1331 = vmatpush.bf16.msra.mxu3 %v1314_v1 }
 0x4bd   :  { %1332 = vmatpush.bf16.msra.mxu3 %v1313_v10 }
 0x4be   :  { %v1271_v50 = vpop.f32.mrf.mxu2 }
 0x4bf   :  { %v1317_v61 = vpack.c.bf16 %v1271_v50, %v1269_v33 }
 0x4c1   :  { %1333 = vmatpush.bf16.msra.mxu3 %v1312_v46 }
 0x4c5   :  { %1334 = vmatpush.bf16.msra.mxu3 %v1311_v56 }
 0x4c6   :  { %v1274_v60 = vpop.f32.mrf.mxu2 }
 0x4c9   :  { %1335 = vmatpush.bf16.msra.mxu3 %v2882_v59 }
 0x4cd   :  { %1336 = vmatpush.bf16.msra.mxu3 %v2883_v35 }
 0x4ce   :  { %v1276_v27 = vpop.f32.mrf.mxu2 }
 0x4cf   :  { %v1318_v47 = vpack.c.bf16 %v1276_v27, %v1274_v60 }
 0x4d0   :  { %1337 = vmatmul.bf16.vlgmr.msra.gmra.mxu3 %v2225_v13 }
 0x4d6   :  { %v1279_v14 = vpop.f32.mrf.mxu2 }
 0x4de   :  { %v1281_v24 = vpop.f32.mrf.mxu2 }
 0x4df   :  { %v1319_v46 = vpack.c.bf16 %v1281_v24, %v1279_v14 }
 0x4e0   :  { %1342 = vmatmul.bf16.gmra.mxu3 %v2243_v19 }
 0x4e6   :  { %v1284_v21 = vpop.f32.mrf.mxu2 }
 0x4ee   :  { %v1286_v57 = vpop.f32.mrf.mxu2 }
 0x4ef   :  { %v1320_v56 = vpack.c.bf16 %v1286_v57, %v1284_v21 }
 0x4f0   :  { %1347 = vmatmul.bf16.gmra.mxu3 %v2261_v25 }
 0x4f6   :  { %v1289_v4 = vpop.f32.mrf.mxu2 }
 0x4fe   :  { %v1291_v12 = vpop.f32.mrf.mxu2 }
 0x4ff   :  { %v1321_v42 = vpack.c.bf16 %v1291_v12, %v1289_v4 }
 0x500   :  { %1352 = vmatmul.bf16.gmra.mxu3 %v2279_v31 }
 0x506   :  { %v1294_v29 = vpop.f32.mrf.mxu2 }
 0x50e   :  { %v1296_v43 = vpop.f32.mrf.mxu2 }
 0x50f   :  { %v1322_v25 = vpack.c.bf16 %v1296_v43, %v1294_v29 }
 0x510   :  { %1357 = vmatmul.bf16.gmra.mxu3 %v2297_v37 }
 0x516   :  { %v1299_v30 = vpop.f32.mrf.mxu2 }
 0x51e   :  { %v1301_v13 = vpop.f32.mrf.mxu2 }
 0x51f   :  { %v1323_v39 = vpack.c.bf16 %v1301_v13, %v1299_v30 }
 0x520   :  { %1362 = vmatmul.bf16.gmra.mxu3 %v2318_v44 }
 0x526   :  { %v1304_v36 = vpop.f32.mrf.mxu2 }
 0x52e   :  { %v1306_v11 = vpop.f32.mrf.mxu2 }
 0x52f   :  { %v1324_v19 = vpack.c.bf16 %v1306_v11, %v1304_v36 }
 0x530   :  { %1367 = vmatmul.bf16.gmra.mxu3 %v2345_v53 }
 0x531   :  { %1418 = vmatpush.bf16.msra.mxu0 %v1324_v19 }
 0x535   :  { %1419 = vmatpush.bf16.msra.mxu0 %v1323_v39 }
 0x539   :  { %1420 = vmatpush.bf16.msra.mxu0 %v1322_v25 }
 0x53d   :  { %1421 = vmatpush.bf16.msra.mxu0 %v1321_v42 }
 0x540   :  { %1372 = vmatmul.bf16.gmra.mxu3 %v2375_v63 }
 0x541   :  { %1422 = vmatpush.bf16.msra.mxu0 %v1320_v56 }
 0x545   :  { %1423 = vmatpush.bf16.msra.mxu0 %v1319_v46 }
 0x549   :  { %1424 = vmatpush.bf16.msra.mxu0 %v1318_v47 }
 0x54d   :  { %1425 = vmatpush.bf16.msra.mxu0 %v1317_v61 }
 0x550   :  { %1426 = vmatmul.bf16.vlgmr.msra.gmra.mxu0 %v2214_v8  ;;  %1377 = vmatmul.bf16.gmra.mxu3 %v2393_v6 }
 0x553   :  { %v1338_v31 = vpop.f32.mrf.mxu3 }
 0x55b   :  { %v1340_v8 = vpop.f32.mrf.mxu3 }
 0x560   :  { %1431 = vmatmul.bf16.gmra.mxu0 %v2234_v16  ;;  %1382 = vmatmul.bf16.gmra.mxu3 %v2418_v32 }
 0x563   :  { %v1343_v16 = vpop.f32.mrf.mxu3 }
 0x56b   :  { %v1345_v37 = vpop.f32.mrf.mxu3 }
 0x570   :  { %1436 = vmatmul.bf16.gmra.mxu0 %v2252_v22  ;;  %1387 = vmatmul.bf16.gmra.mxu3 %v2438_v55 }
 0x573   :  { %v1348_v22 = vpop.f32.mrf.mxu3 }
 0x580   :  { %1441 = vmatmul.bf16.gmra.mxu0 %v2270_v28  ;;  %1392 = vmatmul.bf16.gmra.mxu3 %v2458_v17  ;;  %v2737_v28 = vld [vmem:[%s2875_s8] ss:$0 sm:$0xff] }
 0x581   :  { %v1341_v63 = vadd.f32 %v2737_v28, %v1340_v8  ;;  %v1344_v17 = vadd.f32 %v2737_v28, %v1343_v16  ;;  %v1349_v54 = vadd.f32 %v2737_v28, %v1348_v22 }
 0x590   :  { %1446 = vmatmul.bf16.gmra.mxu0 %v2288_v34  ;;  %1397 = vmatmul.bf16.gmra.mxu3 %v2478_v45  ;;  %v1350_v34 = vpop.f32.mrf.mxu3 }
 0x5a0   :  { %1451 = vmatmul.bf16.gmra.mxu0 %v2306_v40  ;;  %1402 = vmatmul.bf16.gmra.mxu3 %v2498_v5  ;;  %v1339_v40 = vadd.f32 %v2737_v28, %v1338_v31 }
 0x5b0   :  { %1456 = vmatmul.bf16.gmra.mxu0 %v2330_v48  ;;  %1407 = vmatmul.bf16.gmra.mxu3 %v2518_v38  ;;  %v1353_v48 = vpop.f32.mrf.mxu3  ;;  %v1346_v38 = vadd.f32 %v2737_v28, %v1345_v37 }
 0x5b1   :  { %v1354_v61 = vadd.f32 %v2737_v28, %v1353_v48 }
 0x5b8   :  { %v1355_v55 = vpop.f32.mrf.mxu3 }
 0x5b9   :  { %v1356_v27 = vadd.f32 %v2737_v28, %v1355_v55 }
 0x5c0   :  { %1461 = vmatmul.bf16.gmra.mxu0 %v2360_v58  ;;  %1412 = vmatmul.bf16.gmra.mxu3 %v2538_v3 }
 0x5cd   :  { %v1427_v44 = vpop.f32.mrf.mxu0 }
 0x5ce   :  { %v2741_v53 = vadd.f32 %v1427_v44, %v1339_v40 }
 0x5d0   :  { %1466 = vmatmul.bf16.gmra.mxu0 %v2384_v2  ;;  %v1358_v2 = vpop.f32.mrf.mxu3 }
 0x5d1   :  { %v1359_v24 = vadd.f32 %v2737_v28, %v1358_v2 }
 0x5d5   :  { %v1429_v58 = vpop.f32.mrf.mxu0 }
 0x5d6   :  { %v2745_v6 = vadd.f32 %v1429_v58, %v1341_v63 }
 0x5d8   :  { %v1508_v32 = vpack.c.bf16 %v2745_v6, %v2741_v53  ;;  %v1360_v9 = vpop.f32.mrf.mxu3 }
 0x5d9   :  { %v1361_v58 = vadd.f32 %v2737_v28, %v1360_v9 }
 0x5dd   :  { %v1432_v45 = vpop.f32.mrf.mxu0 }
 0x5de   :  { %v2751_v5 = vadd.f32 %v1432_v45, %v1344_v17 }
 0x5e0   :  { %1471 = vmatmul.bf16.gmra.mxu0 %v2408_v15  ;;  %v1363_v7 = vpop.f32.mrf.mxu3  ;;  %v1351_v15 = vadd.f32 %v2737_v28, %v1350_v34 }
 0x5e1   :  { %v1364_v22 = vadd.f32 %v2737_v28, %v1363_v7 }
 0x5e5   :  { %v1434_v51 = vpop.f32.mrf.mxu0 }
 0x5e6   :  { %v2755_v20 = vadd.f32 %v1434_v51, %v1346_v38 }
 0x5e8   :  { %v1509_v0 = vpack.c.bf16 %v2755_v20, %v2751_v5  ;;  %v1365_v50 = vpop.f32.mrf.mxu3 }
 0x5e9   :  { %v1366_v34 = vadd.f32 %v2737_v28, %v1365_v50 }
 0x5ed   :  { %v1437_v3 = vpop.f32.mrf.mxu0 }
 0x5ee   :  { %v2760_v23 = vadd.f32 %v1437_v3, %v1349_v54 }
 0x5f0   :  { %1476 = vmatmul.bf16.gmra.mxu0 %v2428_v41  ;;  %v1368_v35 = vpop.f32.mrf.mxu3 }
 0x5f1   :  { %v1369_v42 = vadd.f32 %v2737_v28, %v1368_v35 }
 0x5f5   :  { %v1439_v33 = vpop.f32.mrf.mxu0 }
 0x5f6   :  { %v2764_v1 = vadd.f32 %v1439_v33, %v1351_v15 }
 0x5f8   :  { %v1510_v10 = vpack.c.bf16 %v2764_v1, %v2760_v23  ;;  %v1370_v21 = vpop.f32.mrf.mxu3 }
 0x5fd   :  { %v1442_v60 = vpop.f32.mrf.mxu0 }
 0x5fe   :  { %v1443_v59 = vadd.f32 %v1442_v60, %v1354_v61 }
 0x600   :  { %1481 = vmatmul.bf16.gmra.mxu0 %v2448_v62  ;;  %v1373_v4 = vpop.f32.mrf.mxu3 }
 0x601   :  { %v1374_v39 = vadd.f32 %v2737_v28, %v1373_v4 }
 0x605   :  { %v1444_v41 = vpop.f32.mrf.mxu0 }
 0x606   :  { %v1445_v47 = vadd.f32 %v1444_v41, %v1356_v27 }
 0x608   :  { %v1511_v14 = vpack.c.bf16 %v1445_v47, %v1443_v59  ;;  %v1375_v29 = vpop.f32.mrf.mxu3 }
 0x60d   :  { %v1447_v46 = vpop.f32.mrf.mxu0 }
 0x60e   :  { %v1448_v57 = vadd.f32 %v1447_v46, %v1359_v24 }
 0x610   :  { %1486 = vmatmul.bf16.gmra.mxu0 %v2468_v26  ;;  %v1378_v43 = vpop.f32.mrf.mxu3  ;;  %v1376_v26 = vadd.f32 %v2737_v28, %v1375_v29 }
 0x615   :  { %v1449_v56 = vpop.f32.mrf.mxu0 }
 0x616   :  { %v1450_v45 = vadd.f32 %v1449_v56, %v1361_v58 }
 0x618   :  { %v1380_v36 = vpop.f32.mrf.mxu3  ;;  %v1512_v51 = vpack.c.bf16 %v1450_v45, %v1448_v57  ;;  %v2042_v45 = vld [vmem:[%s2877_s9 + $0x30] sm:$0xff] }
 0x619   :  { %v1381_v54 = vadd.f32 %v2737_v28, %v1380_v36 }
 0x61d   :  { %v1452_v12 = vpop.f32.mrf.mxu0 }
 0x61e   :  { %v1453_v55 = vadd.f32 %v1452_v12, %v1364_v22 }
 0x620   :  { %1491 = vmatmul.bf16.gmra.mxu0 %v2488_v52  ;;  %v1383_v19 = vpop.f32.mrf.mxu3  ;;  %v1371_v52 = vadd.f32 %v2737_v28, %v1370_v21 }
 0x621   :  { %v1384_v9 = vadd.f32 %v2737_v28, %v1383_v19 }
 0x625   :  { %v1454_v62 = vpop.f32.mrf.mxu0 }
 0x626   :  { %v1455_v44 = vadd.f32 %v1454_v62, %v1366_v34 }
 0x628   :  { %v1513_v2 = vpack.c.bf16 %v1455_v44, %v1453_v55 }
 0x62d   :  { %v1457_v30 = vpop.f32.mrf.mxu0 }
 0x62e   :  { %v1458_v40 = vadd.f32 %v1457_v30, %v1369_v42 }
 0x630   :  { %1496 = vmatmul.bf16.gmra.mxu0 %v2508_v18  ;;  %v1385_v18 = vpop.f32.mrf.mxu3 }
 0x631   :  { %v1386_v60 = vadd.f32 %v2737_v28, %v1385_v18 }
 0x635   :  { %v1459_v13 = vpop.f32.mrf.mxu0 }
 0x636   :  { %v1460_v16 = vadd.f32 %v1459_v13, %v1371_v52 }
 0x638   :  { %v1514_v48 = vpack.c.bf16 %v1460_v16, %v1458_v40  ;;  %v1388_v38 = vpop.f32.mrf.mxu3  ;;  %v1507_v16 = vld [vmem:[%s2876_s2] sm:$0xff] }
 0x639   :  { %v1389_v23 = vadd.f32 %v2737_v28, %v1388_v38  ;;  %v1525_v18 = vunpack.c.l.b16 %v1507_v16 }
 0x63d   :  { %v1462_v11 = vpop.f32.mrf.mxu0 }
 0x63e   :  { %v1463_v31 = vadd.f32 %v1462_v11, %v1374_v39 }
 0x640   :  { %1501 = vmatmul.bf16.gmra.mxu0 %v2528_v49  ;;  %v1379_v49 = vadd.f32 %v2737_v28, %v1378_v43  ;;  %v1390_v50 = vpop.f32.mrf.mxu3 }
 0x641   :  { %v1391_v20 = vadd.f32 %v2737_v28, %v1390_v50 }
 0x645   :  { %v1464_v25 = vpop.f32.mrf.mxu0 }
 0x646   :  { %v1465_v8 = vadd.f32 %v1464_v25, %v1376_v26 }
 0x648   :  { %v1515_v37 = vpack.c.bf16 %v1465_v8, %v1463_v31  ;;  %v1393_v27 = vpop.f32.mrf.mxu3 }
 0x649   :  { %v1394_v53 = vadd.f32 %v2737_v28, %v1393_v27  ;;  %v2040_v27 = vld [vmem:[%s2877_s9 + $0x20] sm:$0xff] }
 0x64a   :  { %1531 = vmatpush.bf16.msrb.mxu1 %v1515_v37 }
 0x64d   :  { %v1467_v63 = vpop.f32.mrf.mxu0 }
 0x64e   :  { %v2784_v17 = vadd.f32 %v1467_v63, %v1379_v49  ;;  %1532 = vmatpush.bf16.msrb.mxu1 %v1514_v48  ;;  %v2043_v48 = vld [vmem:[%s2877_s9 + $0x38] sm:$0xff]  ;;  %v1527_v63 = vpack.c.b16 %v1525_v18, %v1525_v18 }
 0x64f   :  { %1626 = vmatpush.bf16.msrb.mxu3 %v2043_v48 }
 0x650   :  { %v1395_v5 = vpop.f32.mrf.mxu3 }
 0x651   :  { %v1396_v46 = vadd.f32 %v2737_v28, %v1395_v5  ;;  %v2037_v5 = vld [vmem:[%s2877_s9 + $0x8] sm:$0xff] }
 0x652   :  { %1533 = vmatpush.bf16.msrb.mxu1 %v1513_v2 }
 0x653   :  { %1627 = vmatpush.bf16.msrb.mxu3 %v2042_v45 }
 0x655   :  { %v1469_v3 = vpop.f32.mrf.mxu0 }
 0x656   :  { %v2787_v7 = vadd.f32 %v1469_v3, %v1381_v54  ;;  %1534 = vmatpush.bf16.msrb.mxu1 %v1512_v51 }
 0x658   :  { %v1516_v15 = vpack.c.bf16 %v2787_v7, %v2784_v17  ;;  %v1398_v6 = vpop.f32.mrf.mxu3 }
 0x659   :  { %v1399_v12 = vadd.f32 %v2737_v28, %v1398_v6 }
 0x65a   :  { %1535 = vmatpush.bf16.msrb.mxu1 %v1511_v14 }
 0x65d   :  { %v1472_v33 = vpop.f32.mrf.mxu0 }
 0x65e   :  { %v2792_v61 = vadd.f32 %v1472_v33, %v1384_v9  ;;  %1536 = vmatpush.bf16.msrb.mxu1 %v1510_v10  ;;  %v2041_v9 = vld [vmem:[%s2877_s9 + $0x28] sm:$0xff] }
 0x65f   :  { %1628 = vmatpush.bf16.msrb.mxu3 %v2041_v9 }
 0x660   :  { %v1400_v57 = vpop.f32.mrf.mxu3 }
 0x661   :  { %v1401_v33 = vadd.f32 %v2737_v28, %v1400_v57 }
 0x662   :  { %1537 = vmatpush.bf16.msrb.mxu1 %v1509_v0 }
 0x663   :  { %1629 = vmatpush.bf16.msrb.mxu3 %v2040_v27 }
 0x665   :  { %v1474_v59 = vpop.f32.mrf.mxu0 }
 0x666   :  { %v2801_v35 = vadd.f32 %v1474_v59, %v1386_v60  ;;  %1538 = vmatpush.bf16.msrb.mxu1 %v1508_v32 }
 0x668   :  { %v1517_v41 = vpack.c.bf16 %v2801_v35, %v2792_v61  ;;  %v1403_v43 = vpop.f32.mrf.mxu3 }
 0x669   :  { %1539 = vmatmul.bf16.vlgmr.msrb.gmra.mxu1 %v1527_v63  ;;  %v1404_v2 = vadd.f32 %v2737_v28, %v1403_v43 }
 0x66d   :  { %v1477_v1 = vpop.f32.mrf.mxu0 }
 0x66e   :  { %v2809_v10 = vadd.f32 %v1477_v1, %v1389_v23  ;;  %v2039_v1 = vld [vmem:[%s2877_s9 + $0x18] sm:$0xff] }
 0x66f   :  { %1630 = vmatpush.bf16.msrb.mxu3 %v2039_v1 }
 0x670   :  { %v1405_v13 = vpop.f32.mrf.mxu3 }
 0x671   :  { %v1406_v38 = vadd.f32 %v2737_v28, %v1405_v13 }
 0x675   :  { %v1479_v0 = vpop.f32.mrf.mxu0 }
 0x676   :  { %v2812_v47 = vadd.f32 %v1479_v0, %v1391_v20  ;;  %v2036_v20 = vld [vmem:[%s2877_s9] sm:$0xff]  ;;  %v1526_v0 = vunpack.c.h.b16 %v1507_v16 }
 0x678   :  { %v1518_v14 = vpack.c.bf16 %v2812_v47, %v2809_v10  ;;  %v1408_v11 = vpop.f32.mrf.mxu3 }
 0x679   :  { %v1409_v22 = vadd.f32 %v2737_v28, %v1408_v11 }
 0x67d   :  { %v1482_v32 = vpop.f32.mrf.mxu0 }
 0x67e   :  { %v1483_v24 = vadd.f32 %v1482_v32, %v1394_v53  ;;  %v1528_v53 = vpack.c.b16 %v1526_v0, %v1526_v0 }
 0x680   :  { %v1410_v39 = vpop.f32.mrf.mxu3 }
 0x681   :  { %v1411_v40 = vadd.f32 %v2737_v28, %v1410_v39 }
 0x685   :  { %v1484_v21 = vpop.f32.mrf.mxu0 }
 0x686   :  { %v1485_v56 = vadd.f32 %v1484_v21, %v1396_v46  ;;  %v2071_v46 = vld [vmem:[%s2878_s10] ss:$0 sm:$0xff] }
 0x688   :  { %v1519_v4 = vpack.c.bf16 %v1485_v56, %v1483_v24  ;;  %v1413_v42 = vpop.f32.mrf.mxu3 }
 0x689   :  { %v1414_v8 = vadd.f32 %v2737_v28, %v1413_v42 }
 0x68d   :  { %v1487_v29 = vpop.f32.mrf.mxu0 }
 0x68e   :  { %v1488_v62 = vadd.f32 %v1487_v29, %v1399_v12 }
 0x690   :  { %v1415_v31 = vpop.f32.mrf.mxu3 }
 0x691   :  { %v1416_v37 = vadd.f32 %v2737_v28, %v1415_v31  ;;  %v2038_v28 = vld [vmem:[%s2877_s9 + $0x10] sm:$0xff] }
 0x692   :  { %1631 = vmatpush.bf16.msrb.mxu3 %v2038_v28 }
 0x695   :  { %v1489_v30 = vpop.f32.mrf.mxu0 }
 0x696   :  { %v1490_v60 = vadd.f32 %v1489_v30, %v1401_v33  ;;  %1632 = vmatpush.bf16.msrb.mxu3 %v2037_v5 }
 0x698   :  { %v1520_v23 = vpack.c.bf16 %v1490_v60, %v1488_v62 }
 0x69a   :  { %1633 = vmatpush.bf16.msrb.mxu3 %v2036_v20 }
 0x69d   :  { %v1492_v36 = vpop.f32.mrf.mxu0 }
 0x69e   :  { %v1493_v50 = vadd.f32 %v1492_v36, %v1404_v2 }
 0x6a5   :  { %v1494_v19 = vpop.f32.mrf.mxu0 }
 0x6a6   :  { %v1495_v54 = vadd.f32 %v1494_v19, %v1406_v38 }
 0x6a8   :  { %v1521_v59 = vpack.c.bf16 %v1495_v54, %v1493_v50 }
 0x6ad   :  { %v1497_v26 = vpop.f32.mrf.mxu0 }
 0x6ae   :  { %v1498_v51 = vadd.f32 %v1497_v26, %v1409_v22 }
 0x6b5   :  { %v1499_v25 = vpop.f32.mrf.mxu0 }
 0x6b6   :  { %v1500_v58 = vadd.f32 %v1499_v25, %v1411_v40 }
 0x6b8   :  { %v1522_v3 = vpack.c.bf16 %v1500_v58, %v1498_v51 }
 0x6bd   :  { %v1502_v52 = vpop.f32.mrf.mxu0 }
 0x6be   :  { %v1503_v49 = vadd.f32 %v1502_v52, %v1414_v8 }
 0x6c5   :  { %v1504_v34 = vpop.f32.mrf.mxu0 }
 0x6c6   :  { %v1505_v44 = vadd.f32 %v1504_v34, %v1416_v37 }
 0x6c8   :  { %v1523_v55 = vpack.c.bf16 %v1505_v44, %v1503_v49 }
 0x6ca   :  { %1544 = vmatpush.bf16.msrb.mxu2 %v1523_v55 }
 0x6ce   :  { %1545 = vmatpush.bf16.msrb.mxu2 %v1522_v3 }
 0x6d2   :  { %1546 = vmatpush.bf16.msrb.mxu2 %v1521_v59 }
 0x6d6   :  { %1547 = vmatpush.bf16.msrb.mxu2 %v1520_v23 }
 0x6da   :  { %1548 = vmatpush.bf16.msrb.mxu2 %v1519_v4 }
 0x6de   :  { %1549 = vmatpush.bf16.msrb.mxu2 %v1518_v14 }
 0x6e2   :  { %1550 = vmatpush.bf16.msrb.mxu2 %v1517_v41 }
 0x6e6   :  { %1551 = vmatpush.bf16.msrb.mxu2 %v1516_v15  ;;  %v1540_v6 = vpop.f32.mrf.mxu1 }
 0x6e9   :  { %1552 = vmatmul.bf16.vlgmr.msrb.gmra.mxu2 %v1528_v53 }
 0x6ee   :  { %v1542_v10 = vpop.f32.mrf.mxu1 }
 0x76c   :  { %v1553_v47 = vpop.f32.mrf.mxu2 }
 0x76d   :  { %v1554_v14 = vadd.f32 %v1553_v47, %v1540_v6 }
 0x76f   :  { %v1557_v32 = vpack.c.bf16 %v1554_v14, %v1554_v14 }
 0x771   :  { %1634 = vmatmul.bf16.vlgmr.msrb.gmra.mxu3 %v1557_v32 }
 0x774   :  { %v1555_v24 = vpop.f32.mrf.mxu2 }
 0x7f4   :  { %v1635_v61 = vpop.f32.mrf.mxu3 }
 0x7f5   :  { %v1636_v35 = vadd.f32 %v2071_v46, %v1635_v61 }
 0x7f7   :  { %1639 = vst [vmem:[%s2879_s11] sm:$0xff] %v1636_v35 }
 0x7fc   :  { %v1637_v17 = vpop.f32.mrf.mxu3 }

</bundles_post_ra>
